<compile_context>
chip_gen: v7x
topology: tpu7x:2x2x1
jax: 0.10.0
libtpu: 0.0.40
codegen_flags: <defaults>
</compile_context>

<pallas_src>
import functools
import math

import jax
import jax.numpy as jnp
from jax.experimental import pallas as pl
from jax.experimental.pallas import tpu as pltpu

LN_EPS = 1e-12


# ----------------------------- in-kernel helpers -----------------------------

def _layernorm(x, g, b):
    mean = jnp.mean(x, axis=-1, keepdims=True)
    var = jnp.mean(jnp.square(x - mean), axis=-1, keepdims=True)
    inv = jax.lax.rsqrt(var + LN_EPS)
    return (x - mean) * inv * g + b


def _gelu(y):
    # TODO(synk): tanh-approximate GELU; HF BERT uses erf-GELU (numerically very close).
    c = math.sqrt(2.0 / math.pi)
    return 0.5 * y * (1.0 + jnp.tanh(c * (y + 0.044715 * y * y * y)))


def _dot(a, b):
    # bf16 operands, f32 accumulation on the MXU.
    return jnp.dot(a.astype(jnp.bfloat16), b.astype(jnp.bfloat16),
                   preferred_element_type=jnp.float32)


# ------------------------------- fused kernel --------------------------------

def _lm_fused_kernel(*refs, mode, n_heads):
    if mode == "train":
        (emb_ref, eg_ref, ebias_ref,
         wqkv_ref, bqkv_ref, wo_ref, bo_ref, l1g_ref, l1b_ref,
         w1_ref, b1_ref, w2_ref, b2_ref, l2g_ref, l2b_ref,
         cw_ref, cb_ref, lab_ref, out_ref, h_ref) = refs
    else:
        (emb_ref, eg_ref, ebias_ref,
         wqkv_ref, bqkv_ref, wo_ref, bo_ref, l1g_ref, l1b_ref,
         w1_ref, b1_ref, w2_ref, b2_ref, l2g_ref, l2b_ref,
         cw_ref, cb_ref, out_ref, h_ref) = refs
        lab_ref = None

    layer = pl.program_id(1)
    n_layers = pl.num_programs(1)
    S, H = h_ref.shape
    dh = H // n_heads
    scale = 1.0 / math.sqrt(dh)
    causal = (mode == "train")

    # ---- first layer step: embedding LayerNorm into resident VMEM activation ----
    @pl.when(layer == 0)
    def _():
        h_ref[...] = _layernorm(emb_ref[0], eg_ref[...], ebias_ref[...])

    # ---- one fused transformer layer ----
    x = h_ref[...]                                   # (S, H) f32, resident
    wqkv = wqkv_ref[0]                               # (H, 3H) bf16
    wo = wo_ref[0]                                   # (H, H) bf16
    qkv = _dot(x, wqkv) + bqkv_ref[0]                # (S, 3H) f32

    if causal:
        row = jax.lax.broadcasted_iota(jnp.int32, (S, S), 0)
        col = jax.lax.broadcasted_iota(jnp.int32, (S, S), 1)
        keep = col <= row                            # causal mask built in-kernel

    ctx_heads = []
    for hd in range(n_heads):                        # static unroll, heads sliced on lanes
        q_h = qkv[:, hd * dh:(hd + 1) * dh]
        k_h = qkv[:, H + hd * dh:H + (hd + 1) * dh]
        v_h = qkv[:, 2 * H + hd * dh:2 * H + (hd + 1) * dh]
        s = jax.lax.dot_general(
            q_h.astype(jnp.bfloat16), k_h.astype(jnp.bfloat16),
            (((1,), (1,)), ((), ())),
            preferred_element_type=jnp.float32) * scale          # (S, S)
        if causal:
            s = jnp.where(keep, s, -1e9)
        s = s - jnp.max(s, axis=-1, keepdims=True)
        p = jnp.exp(s)
        p = p * pl.reciprocal(jnp.sum(p, axis=-1, keepdims=True), approx=True)
        ctx_heads.append(_dot(p, v_h))                           # (S, dh)
    ctx = jnp.concatenate(ctx_heads, axis=-1)                    # (S, H) head merge
    attn = _dot(ctx, wo) + bo_ref[0]                             # single output proj

    h1 = _layernorm(x + attn, l1g_ref[0], l1b_ref[0])            # fused add + LN
    ff = _gelu(_dot(h1, w1_ref[0]) + b1_ref[0])
    ff = _dot(ff, w2_ref[0]) + b2_ref[0]
    h2 = _layernorm(h1 + ff, l2g_ref[0], l2b_ref[0])             # fused add + LN
    h_ref[...] = h2

    # ---- last layer step: classifier + (CE loss | softmax) ----
    @pl.when(layer == n_layers - 1)
    def _():
        logits = _dot(h2, cw_ref[...]) + cb_ref[...]             # (S, V) f32
        z = logits - jnp.max(logits, axis=-1, keepdims=True)
        ez = jnp.exp(z)
        sez = jnp.sum(ez, axis=-1, keepdims=True)
        if mode == "train":
            logp = z - jnp.log(sez)
            lab = lab_ref[0]                                     # (S, 1) int32
            onehot = jax.lax.broadcasted_iota(jnp.int32, logits.shape, 1) == lab
            nll = -jnp.sum(jnp.where(onehot, logp, 0.0), axis=-1, keepdims=True)
            out_ref[0] = jnp.mean(nll, keepdims=True)            # per-batch mean CE
        else:
            out_ref[0] = ez / sez                                # exact softmax


def _lm_pallas_call(params, emb, labels=None):
    mode = "train" if labels is not None else "infer"
    B, S, H = emb.shape
    L = params["wqkv"].shape[0]
    V = params["classify_w"].shape[1]
    n_heads = params["num_heads"]

    def layer_spec(a):    # per-layer weight: block index follows the layer grid axis
        return pl.BlockSpec((1,) + a.shape[1:], lambda b, l: (l, 0, 0))

    def const_spec(a):    # shared 2-D param: resident for the whole kernel
        return pl.BlockSpec(a.shape, lambda b, l: (0, 0))

    def batch_spec(a):    # per-batch 3-D tensor: re-DMA'd only when b changes
        return pl.BlockSpec((1,) + a.shape[1:], lambda b, l: (b, 0, 0))

    args = [emb,
            params["emb_ln_g"], params["emb_ln_b"],
            params["wqkv"], params["bqkv"], params["wo"], params["bo"],
            params["ln1_g"], params["ln1_b"],
            params["w1"], params["b1"], params["w2"], params["b2"],
            params["ln2_g"], params["ln2_b"],
            params["classify_w"], params["classify_b"]]
    in_specs = [batch_spec(emb),
                const_spec(params["emb_ln_g"]), const_spec(params["emb_ln_b"]),
                layer_spec(params["wqkv"]), layer_spec(params["bqkv"]),
                layer_spec(params["wo"]), layer_spec(params["bo"]),
                layer_spec(params["ln1_g"]), layer_spec(params["ln1_b"]),
                layer_spec(params["w1"]), layer_spec(params["b1"]),
                layer_spec(params["w2"]), layer_spec(params["b2"]),
                layer_spec(params["ln2_g"]), layer_spec(params["ln2_b"]),
                const_spec(params["classify_w"]), const_spec(params["classify_b"])]

    if mode == "train":
        lab = labels.reshape(B, S, 1).astype(jnp.int32)
        args.append(lab)
        in_specs.append(batch_spec(lab))
        out_shape = jax.ShapeDtypeStruct((B, 1, 1), jnp.float32)
        out_specs = pl.BlockSpec((1, 1, 1), lambda b, l: (b, 0, 0))
    else:
        out_shape = jax.ShapeDtypeStruct((B, S, V), jnp.float32)
        out_specs = pl.BlockSpec((1, S, V), lambda b, l: (b, 0, 0))

    kern = functools.partial(_lm_fused_kernel, mode=mode, n_heads=n_heads)
    return pl.pallas_call(
        kern,
        out_shape=out_shape,
        grid=(B, L),
        in_specs=in_specs,
        out_specs=out_specs,
        scratch_shapes=[pltpu.VMEM((S, H), jnp.float32)],   # resident activations
        compiler_params=pltpu.CompilerParams(
            dimension_semantics=("parallel", "arbitrary")),  # batch across TCs (v7x)
    )(*args)


# --------------------------- model definition ---------------------------

def init_params(key, *, vocab_size, hidden, n_layers, n_heads, ffn_size, max_pos):
    std = 0.02
    keys = jax.random.split(key, 8)
    H, F, L = hidden, ffn_size, n_layers

    def nrm(k, shape, dtype=jnp.float32):
        return (jax.random.normal(k, shape, jnp.float32) * std).astype(dtype)

    return {
        "num_heads": n_heads,
        "word_emb": nrm(keys[0], (vocab_size, H)),
        "pos_emb": nrm(keys[1], (max_pos, H)),
        "type_emb": nrm(keys[2], (2, H)),
        "emb_ln_g": jnp.ones((1, H), jnp.float32),
        "emb_ln_b": jnp.zeros((1, H), jnp.float32),
        # per-layer weights stacked on a leading layer axis; matmul weights in bf16
        "wqkv": nrm(keys[3], (L, H, 3 * H), jnp.bfloat16),   # fused Q|K|V
        "bqkv": jnp.zeros((L, 1, 3 * H), jnp.float32),
        "wo": nrm(keys[4], (L, H, H), jnp.bfloat16),
        "bo": jnp.zeros((L, 1, H), jnp.float32),
        "ln1_g": jnp.ones((L, 1, H), jnp.float32),
        "ln1_b": jnp.zeros((L, 1, H), jnp.float32),
        "w1": nrm(keys[5], (L, H, F), jnp.bfloat16),
        "b1": jnp.zeros((L, 1, F), jnp.float32),
        "w2": nrm(keys[6], (L, F, H), jnp.bfloat16),
        "b2": jnp.zeros((L, 1, H), jnp.float32),
        "ln2_g": jnp.ones((L, 1, H), jnp.float32),
        "ln2_b": jnp.zeros((L, 1, H), jnp.float32),
        "classify_w": nrm(keys[7], (H, vocab_size), jnp.bfloat16),
        "classify_b": jnp.zeros((1, vocab_size), jnp.float32),
    }


def language_model_forward(params, x, y=None):
    """Matches LanguageModel.forward: CE loss if y is given, else softmax probs."""
    B, S = x.shape
    # TODO(synk): embedding-table gather (word/pos/type) stays in XLA — no clean
    # Pallas equivalent for a vocab-sized dynamic gather at this scale.
    emb = (params["word_emb"][x]
           + params["pos_emb"][:S][None, :, :]
           + params["type_emb"][0][None, None, :])
    # TODO(synk): BERT pooler output ("_") is unused in the PyTorch forward; skipped.
    if y is not None:
        per_batch = _lm_pallas_call(params, emb, labels=y)   # (B,1,1) per-batch mean CE
        return jnp.mean(per_batch)   # equal positions per batch -> same as global mean
    return _lm_pallas_call(params, emb, labels=None)          # (B, S, V) softmax


# --------------------------------- main ---------------------------------

if __name__ == "__main__":
    VOCAB, HIDDEN, LAYERS, HEADS, FFN, MAX_POS = 64, 32, 2, 2, 64, 16
    B, S = 2, 8

    key = jax.random.PRNGKey(0)
    pkey, xkey, ykey = jax.random.split(key, 3)
    params = init_params(pkey, vocab_size=VOCAB, hidden=HIDDEN, n_layers=LAYERS,
                         n_heads=HEADS, ffn_size=FFN, max_pos=MAX_POS)

    x = jax.random.randint(xkey, (B, S), 0, VOCAB, dtype=jnp.int32)
    y = jax.random.randint(ykey, (B, S), 0, VOCAB, dtype=jnp.int32)

    # training path: scalar cross-entropy loss (causal mask, as in the module)
    loss = jax.block_until_ready(language_model_forward(params, x, y))

    # inference path: softmax over vocab (full attention)
    probs = jax.block_until_ready(language_model_forward(params, x, None))

    assert loss.shape == () and jnp.isfinite(loss)
    assert probs.shape == (B, S, VOCAB)
    assert jnp.allclose(jnp.sum(probs, axis=-1), 1.0, atol=1e-4)

    print("KERNEL_OK")
</pallas_src>

<mosaic_0001>
module attributes {stable_mosaic.version = 11 : i64} {
  func.func @_lm_fused_kernel(%arg0: i32, %arg1: i32, %arg2: memref<1x8x32xf32, #tpu.memory_space<vmem>>, %arg3: memref<1x32xf32, #tpu.memory_space<vmem>>, %arg4: memref<1x32xf32, #tpu.memory_space<vmem>>, %arg5: memref<1x32x96xbf16, #tpu.memory_space<vmem>>, %arg6: memref<1x1x96xf32, #tpu.memory_space<vmem>>, %arg7: memref<1x32x32xbf16, #tpu.memory_space<vmem>>, %arg8: memref<1x1x32xf32, #tpu.memory_space<vmem>>, %arg9: memref<1x1x32xf32, #tpu.memory_space<vmem>>, %arg10: memref<1x1x32xf32, #tpu.memory_space<vmem>>, %arg11: memref<1x32x64xbf16, #tpu.memory_space<vmem>>, %arg12: memref<1x1x64xf32, #tpu.memory_space<vmem>>, %arg13: memref<1x64x32xbf16, #tpu.memory_space<vmem>>, %arg14: memref<1x1x32xf32, #tpu.memory_space<vmem>>, %arg15: memref<1x1x32xf32, #tpu.memory_space<vmem>>, %arg16: memref<1x1x32xf32, #tpu.memory_space<vmem>>, %arg17: memref<32x64xbf16, #tpu.memory_space<vmem>>, %arg18: memref<1x64xf32, #tpu.memory_space<vmem>>, %arg19: memref<1x8x1xi32, #tpu.memory_space<vmem>>, %arg20: memref<1x1x1xf32, #tpu.memory_space<vmem>>, %arg21: memref<8x32xf32, #tpu.memory_space<vmem>>) attributes {dimension_semantics = [#tpu.dimension_semantics<parallel>, #tpu.dimension_semantics<arbitrary>], iteration_bounds = array<i64: 2, 2>, scalar_prefetch = 0 : i64, scratch_operands = 1 : i64, tpu.core_type = #tpu.core_type<tc>, window_params = [{transform_indices = @transform_0, window_bounds = array<i64: 1, 8, 32>}, {pipeline_mode = #tpu.pipeline_mode<synchronous>, transform_indices = @transform_1, window_bounds = array<i64: 1, 32>}, {pipeline_mode = #tpu.pipeline_mode<synchronous>, transform_indices = @transform_2, window_bounds = array<i64: 1, 32>}, {transform_indices = @transform_3, window_bounds = array<i64: 1, 32, 96>}, {transform_indices = @transform_4, window_bounds = array<i64: 1, 1, 96>}, {transform_indices = @transform_5, window_bounds = array<i64: 1, 32, 32>}, {transform_indices = @transform_6, window_bounds = array<i64: 1, 1, 32>}, {transform_indices = @transform_7, window_bounds = array<i64: 1, 1, 32>}, {transform_indices = @transform_8, window_bounds = array<i64: 1, 1, 32>}, {transform_indices = @transform_9, window_bounds = array<i64: 1, 32, 64>}, {transform_indices = @transform_10, window_bounds = array<i64: 1, 1, 64>}, {transform_indices = @transform_11, window_bounds = array<i64: 1, 64, 32>}, {transform_indices = @transform_12, window_bounds = array<i64: 1, 1, 32>}, {transform_indices = @transform_13, window_bounds = array<i64: 1, 1, 32>}, {transform_indices = @transform_14, window_bounds = array<i64: 1, 1, 32>}, {pipeline_mode = #tpu.pipeline_mode<synchronous>, transform_indices = @transform_15, window_bounds = array<i64: 32, 64>}, {pipeline_mode = #tpu.pipeline_mode<synchronous>, transform_indices = @transform_16, window_bounds = array<i64: 1, 64>}, {transform_indices = @transform_17, window_bounds = array<i64: 1, 8, 1>}, {transform_indices = @transform_18, window_bounds = array<i64: 1, 1, 1>}]} {
    %c0_i32 = arith.constant 0 : i32
    %0 = arith.cmpi eq, %arg1, %c0_i32 : i32
    %1 = arith.extui %0 : i1 to i32
    %c0_i32_0 = arith.constant 0 : i32
    %2 = arith.cmpi ne, %1, %c0_i32_0 : i32
    scf.if %2 {
      %c0_70 = arith.constant 0 : index
      %c0_71 = arith.constant 0 : index
      %c0_72 = arith.constant 0 : index
      %157 = vector.load %arg2[%c0_70, %c0_71, %c0_72] : memref<1x8x32xf32, #tpu.memory_space<vmem>>, vector<1x8x32xf32>
      %158 = vector.shape_cast %157 : vector<1x8x32xf32> to vector<8x32xf32>
      %c0_73 = arith.constant 0 : index
      %c0_74 = arith.constant 0 : index
      %159 = vector.load %arg3[%c0_73, %c0_74] : memref<1x32xf32, #tpu.memory_space<vmem>>, vector<1x32xf32>
      %c0_75 = arith.constant 0 : index
      %c0_76 = arith.constant 0 : index
      %160 = vector.load %arg4[%c0_75, %c0_76] : memref<1x32xf32, #tpu.memory_space<vmem>>, vector<1x32xf32>
      %cst_77 = arith.constant dense<0.000000e+00> : vector<8xf32>
      %161 = vector.multi_reduction <add>, %158, %cst_77 [1] : vector<8x32xf32> to vector<8xf32>
      %162 = vector.shape_cast %161 : vector<8xf32> to vector<8x1xf32>
      %cst_78 = arith.constant 3.200000e+01 : f32
      %163 = vector.broadcast %cst_78 : f32 to vector<8x1xf32>
      %164 = arith.divf %162, %163 : vector<8x1xf32>
      %165 = vector.broadcast %164 : vector<8x1xf32> to vector<8x32xf32>
      %166 = arith.subf %158, %165 : vector<8x32xf32>
      %167 = arith.mulf %166, %166 : vector<8x32xf32>
      %cst_79 = arith.constant dense<0.000000e+00> : vector<8xf32>
      %168 = vector.multi_reduction <add>, %167, %cst_79 [1] : vector<8x32xf32> to vector<8xf32>
      %169 = vector.shape_cast %168 : vector<8xf32> to vector<8x1xf32>
      %cst_80 = arith.constant 3.200000e+01 : f32
      %170 = vector.broadcast %cst_80 : f32 to vector<8x1xf32>
      %171 = arith.divf %169, %170 : vector<8x1xf32>
      %cst_81 = arith.constant 9.99999996E-13 : f32
      %172 = vector.broadcast %cst_81 : f32 to vector<8x1xf32>
      %173 = arith.addf %171, %172 : vector<8x1xf32>
      %174 = math.rsqrt %173 : vector<8x1xf32>
      %175 = vector.broadcast %164 : vector<8x1xf32> to vector<8x32xf32>
      %176 = arith.subf %158, %175 : vector<8x32xf32>
      %177 = vector.broadcast %174 : vector<8x1xf32> to vector<8x32xf32>
      %178 = arith.mulf %176, %177 : vector<8x32xf32>
      %179 = vector.broadcast %159 : vector<1x32xf32> to vector<8x32xf32>
      %180 = arith.mulf %178, %179 : vector<8x32xf32>
      %181 = vector.broadcast %160 : vector<1x32xf32> to vector<8x32xf32>
      %182 = arith.addf %180, %181 : vector<8x32xf32>
      %c0_82 = arith.constant 0 : index
      %c0_83 = arith.constant 0 : index
      %183 = vector.load %arg21[%c0_82, %c0_83] : memref<8x32xf32, #tpu.memory_space<vmem>>, vector<8x32xf32>
      tpu.vector_store %arg21[%c0_82, %c0_83], %182 {strides = array<i32>} : memref<8x32xf32, #tpu.memory_space<vmem>>, vector<8x32xf32>,
    } else {
    }
    %c0 = arith.constant 0 : index
    %c0_1 = arith.constant 0 : index
    %3 = vector.load %arg21[%c0, %c0_1] : memref<8x32xf32, #tpu.memory_space<vmem>>, vector<8x32xf32>
    %c0_2 = arith.constant 0 : index
    %c0_3 = arith.constant 0 : index
    %c0_4 = arith.constant 0 : index
    %4 = vector.load %arg5[%c0_2, %c0_3, %c0_4] : memref<1x32x96xbf16, #tpu.memory_space<vmem>>, vector<1x32x96xbf16>
    %5 = vector.shape_cast %4 : vector<1x32x96xbf16> to vector<32x96xbf16>
    %c0_5 = arith.constant 0 : index
    %c0_6 = arith.constant 0 : index
    %c0_7 = arith.constant 0 : index
    %6 = vector.load %arg7[%c0_5, %c0_6, %c0_7] : memref<1x32x32xbf16, #tpu.memory_space<vmem>>, vector<1x32x32xbf16>
    %7 = vector.shape_cast %6 : vector<1x32x32xbf16> to vector<32x32xbf16>
    %8 = arith.truncf %3 : vector<8x32xf32> to vector<8x32xbf16>
    %cst = arith.constant dense<0.000000e+00> : vector<8x96xf32>
    %9 = tpu.matmul %8, %5, %cst {dimension_numbers = #tpu.dot_dimension_numbers<[1], [0], [0], [1], [0, 0, 1, 1], [], []>} : vector<8x32xbf16>, vector<32x96xbf16>, vector<8x96xf32> -> vector<8x96xf32>
    %c0_8 = arith.constant 0 : index
    %c0_9 = arith.constant 0 : index
    %c0_10 = arith.constant 0 : index
    %10 = vector.load %arg6[%c0_8, %c0_9, %c0_10] : memref<1x1x96xf32, #tpu.memory_space<vmem>>, vector<1x1x96xf32>
    %11 = vector.shape_cast %10 : vector<1x1x96xf32> to vector<1x96xf32>
    %12 = vector.broadcast %11 : vector<1x96xf32> to vector<8x96xf32>
    %13 = arith.addf %9, %12 : vector<8x96xf32>
    %14 = tpu.iota {dimensions = array<i32: 0>} : vector<8x8xi32>
    %15 = tpu.iota {dimensions = array<i32: 1>} : vector<8x8xi32>
    %16 = arith.cmpi sle, %15, %14 : vector<8x8xi32>
    %17 = vector.extract_strided_slice %13 {offsets = [0, 0], sizes = [8, 16], strides = [1, 1]} : vector<8x96xf32> to vector<8x16xf32>
    %18 = vector.extract_strided_slice %13 {offsets = [0, 32], sizes = [8, 16], strides = [1, 1]} : vector<8x96xf32> to vector<8x16xf32>
    %19 = vector.extract_strided_slice %13 {offsets = [0, 64], sizes = [8, 16], strides = [1, 1]} : vector<8x96xf32> to vector<8x16xf32>
    %20 = arith.truncf %17 : vector<8x16xf32> to vector<8x16xbf16>
    %21 = arith.truncf %18 : vector<8x16xf32> to vector<8x16xbf16>
    %cst_11 = arith.constant dense<0.000000e+00> : vector<8x8xf32>
    %22 = tpu.matmul %20, %21, %cst_11 {dimension_numbers = #tpu.dot_dimension_numbers<[1], [1], [0], [0], [0, 0, 1, 0], [], []>} : vector<8x16xbf16>, vector<8x16xbf16>, vector<8x8xf32> -> vector<8x8xf32>
    %cst_12 = arith.constant 2.500000e-01 : f32
    %23 = vector.broadcast %cst_12 : f32 to vector<8x8xf32>
    %24 = arith.mulf %22, %23 : vector<8x8xf32>
    %cst_13 = arith.constant -1.000000e+09 : f32
    %25 = vector.broadcast %cst_13 : f32 to vector<8x8xf32>
    %26 = arith.select %16, %24, %25 : vector<8x8xi1>, vector<8x8xf32>
    %cst_14 = arith.constant dense<0xFF800000> : vector<8xf32>
    %27 = vector.multi_reduction <maximumf>, %26, %cst_14 [1] : vector<8x8xf32> to vector<8xf32>
    %28 = vector.shape_cast %27 : vector<8xf32> to vector<8x1xf32>
    %29 = vector.broadcast %28 : vector<8x1xf32> to vector<8x8xf32>
    %30 = arith.subf %26, %29 : vector<8x8xf32>
    %31 = math.exp %30 : vector<8x8xf32>
    %cst_15 = arith.constant dense<0.000000e+00> : vector<8xf32>
    %32 = vector.multi_reduction <add>, %31, %cst_15 [1] : vector<8x8xf32> to vector<8xf32>
    %33 = vector.shape_cast %32 : vector<8xf32> to vector<8x1xf32>
    %34 = tpu.reciprocal %33 {approx = true} : vector<8x1xf32> -> vector<8x1xf32>
    %35 = vector.broadcast %34 : vector<8x1xf32> to vector<8x8xf32>
    %36 = arith.mulf %31, %35 : vector<8x8xf32>
    %37 = arith.truncf %36 : vector<8x8xf32> to vector<8x8xbf16>
    %38 = arith.truncf %19 : vector<8x16xf32> to vector<8x16xbf16>
    %cst_16 = arith.constant dense<0.000000e+00> : vector<8x16xf32>
    %39 = tpu.matmul %37, %38, %cst_16 {dimension_numbers = #tpu.dot_dimension_numbers<[1], [0], [0], [1], [0, 0, 1, 1], [], []>} : vector<8x8xbf16>, vector<8x16xbf16>, vector<8x16xf32> -> vector<8x16xf32>
    %40 = vector.extract_strided_slice %13 {offsets = [0, 16], sizes = [8, 16], strides = [1, 1]} : vector<8x96xf32> to vector<8x16xf32>
    %41 = vector.extract_strided_slice %13 {offsets = [0, 48], sizes = [8, 16], strides = [1, 1]} : vector<8x96xf32> to vector<8x16xf32>
    %42 = vector.extract_strided_slice %13 {offsets = [0, 80], sizes = [8, 16], strides = [1, 1]} : vector<8x96xf32> to vector<8x16xf32>
    %43 = arith.truncf %40 : vector<8x16xf32> to vector<8x16xbf16>
    %44 = arith.truncf %41 : vector<8x16xf32> to vector<8x16xbf16>
    %cst_17 = arith.constant dense<0.000000e+00> : vector<8x8xf32>
    %45 = tpu.matmul %43, %44, %cst_17 {dimension_numbers = #tpu.dot_dimension_numbers<[1], [1], [0], [0], [0, 0, 1, 0], [], []>} : vector<8x16xbf16>, vector<8x16xbf16>, vector<8x8xf32> -> vector<8x8xf32>
    %cst_18 = arith.constant 2.500000e-01 : f32
    %46 = vector.broadcast %cst_18 : f32 to vector<8x8xf32>
    %47 = arith.mulf %45, %46 : vector<8x8xf32>
    %cst_19 = arith.constant -1.000000e+09 : f32
    %48 = vector.broadcast %cst_19 : f32 to vector<8x8xf32>
    %49 = arith.select %16, %47, %48 : vector<8x8xi1>, vector<8x8xf32>
    %cst_20 = arith.constant dense<0xFF800000> : vector<8xf32>
    %50 = vector.multi_reduction <maximumf>, %49, %cst_20 [1] : vector<8x8xf32> to vector<8xf32>
    %51 = vector.shape_cast %50 : vector<8xf32> to vector<8x1xf32>
    %52 = vector.broadcast %51 : vector<8x1xf32> to vector<8x8xf32>
    %53 = arith.subf %49, %52 : vector<8x8xf32>
    %54 = math.exp %53 : vector<8x8xf32>
    %cst_21 = arith.constant dense<0.000000e+00> : vector<8xf32>
    %55 = vector.multi_reduction <add>, %54, %cst_21 [1] : vector<8x8xf32> to vector<8xf32>
    %56 = vector.shape_cast %55 : vector<8xf32> to vector<8x1xf32>
    %57 = tpu.reciprocal %56 {approx = true} : vector<8x1xf32> -> vector<8x1xf32>
    %58 = vector.broadcast %57 : vector<8x1xf32> to vector<8x8xf32>
    %59 = arith.mulf %54, %58 : vector<8x8xf32>
    %60 = arith.truncf %59 : vector<8x8xf32> to vector<8x8xbf16>
    %61 = arith.truncf %42 : vector<8x16xf32> to vector<8x16xbf16>
    %cst_22 = arith.constant dense<0.000000e+00> : vector<8x16xf32>
    %62 = tpu.matmul %60, %61, %cst_22 {dimension_numbers = #tpu.dot_dimension_numbers<[1], [0], [0], [1], [0, 0, 1, 1], [], []>} : vector<8x8xbf16>, vector<8x16xbf16>, vector<8x16xf32> -> vector<8x16xf32>
    %63 = tpu.concatenate %39, %62 in 1 : vector<8x16xf32>, vector<8x16xf32> -> vector<8x32xf32>
    %64 = arith.truncf %63 : vector<8x32xf32> to vector<8x32xbf16>
    %cst_23 = arith.constant dense<0.000000e+00> : vector<8x32xf32>
    %65 = tpu.matmul %64, %7, %cst_23 {dimension_numbers = #tpu.dot_dimension_numbers<[1], [0], [0], [1], [0, 0, 1, 1], [], []>} : vector<8x32xbf16>, vector<32x32xbf16>, vector<8x32xf32> -> vector<8x32xf32>
    %c0_24 = arith.constant 0 : index
    %c0_25 = arith.constant 0 : index
    %c0_26 = arith.constant 0 : index
    %66 = vector.load %arg8[%c0_24, %c0_25, %c0_26] : memref<1x1x32xf32, #tpu.memory_space<vmem>>, vector<1x1x32xf32>
    %67 = vector.shape_cast %66 : vector<1x1x32xf32> to vector<1x32xf32>
    %68 = vector.broadcast %67 : vector<1x32xf32> to vector<8x32xf32>
    %69 = arith.addf %65, %68 : vector<8x32xf32>
    %70 = arith.addf %3, %69 : vector<8x32xf32>
    %c0_27 = arith.constant 0 : index
    %c0_28 = arith.constant 0 : index
    %c0_29 = arith.constant 0 : index
    %71 = vector.load %arg9[%c0_27, %c0_28, %c0_29] : memref<1x1x32xf32, #tpu.memory_space<vmem>>, vector<1x1x32xf32>
    %72 = vector.shape_cast %71 : vector<1x1x32xf32> to vector<1x32xf32>
    %c0_30 = arith.constant 0 : index
    %c0_31 = arith.constant 0 : index
    %c0_32 = arith.constant 0 : index
    %73 = vector.load %arg10[%c0_30, %c0_31, %c0_32] : memref<1x1x32xf32, #tpu.memory_space<vmem>>, vector<1x1x32xf32>
    %74 = vector.shape_cast %73 : vector<1x1x32xf32> to vector<1x32xf32>
    %cst_33 = arith.constant dense<0.000000e+00> : vector<8xf32>
    %75 = vector.multi_reduction <add>, %70, %cst_33 [1] : vector<8x32xf32> to vector<8xf32>
    %76 = vector.shape_cast %75 : vector<8xf32> to vector<8x1xf32>
    %cst_34 = arith.constant 3.200000e+01 : f32
    %77 = vector.broadcast %cst_34 : f32 to vector<8x1xf32>
    %78 = arith.divf %76, %77 : vector<8x1xf32>
    %79 = vector.broadcast %78 : vector<8x1xf32> to vector<8x32xf32>
    %80 = arith.subf %70, %79 : vector<8x32xf32>
    %81 = arith.mulf %80, %80 : vector<8x32xf32>
    %cst_35 = arith.constant dense<0.000000e+00> : vector<8xf32>
    %82 = vector.multi_reduction <add>, %81, %cst_35 [1] : vector<8x32xf32> to vector<8xf32>
    %83 = vector.shape_cast %82 : vector<8xf32> to vector<8x1xf32>
    %cst_36 = arith.constant 3.200000e+01 : f32
    %84 = vector.broadcast %cst_36 : f32 to vector<8x1xf32>
    %85 = arith.divf %83, %84 : vector<8x1xf32>
    %cst_37 = arith.constant 9.99999996E-13 : f32
    %86 = vector.broadcast %cst_37 : f32 to vector<8x1xf32>
    %87 = arith.addf %85, %86 : vector<8x1xf32>
    %88 = math.rsqrt %87 : vector<8x1xf32>
    %89 = vector.broadcast %78 : vector<8x1xf32> to vector<8x32xf32>
    %90 = arith.subf %70, %89 : vector<8x32xf32>
    %91 = vector.broadcast %88 : vector<8x1xf32> to vector<8x32xf32>
    %92 = arith.mulf %90, %91 : vector<8x32xf32>
    %93 = vector.broadcast %72 : vector<1x32xf32> to vector<8x32xf32>
    %94 = arith.mulf %92, %93 : vector<8x32xf32>
    %95 = vector.broadcast %74 : vector<1x32xf32> to vector<8x32xf32>
    %96 = arith.addf %94, %95 : vector<8x32xf32>
    %c0_38 = arith.constant 0 : index
    %c0_39 = arith.constant 0 : index
    %c0_40 = arith.constant 0 : index
    %97 = vector.load %arg11[%c0_38, %c0_39, %c0_40] : memref<1x32x64xbf16, #tpu.memory_space<vmem>>, vector<1x32x64xbf16>
    %98 = vector.shape_cast %97 : vector<1x32x64xbf16> to vector<32x64xbf16>
    %99 = arith.truncf %96 : vector<8x32xf32> to vector<8x32xbf16>
    %cst_41 = arith.constant dense<0.000000e+00> : vector<8x64xf32>
    %100 = tpu.matmul %99, %98, %cst_41 {dimension_numbers = #tpu.dot_dimension_numbers<[1], [0], [0], [1], [0, 0, 1, 1], [], []>} : vector<8x32xbf16>, vector<32x64xbf16>, vector<8x64xf32> -> vector<8x64xf32>
    %c0_42 = arith.constant 0 : index
    %c0_43 = arith.constant 0 : index
    %c0_44 = arith.constant 0 : index
    %101 = vector.load %arg12[%c0_42, %c0_43, %c0_44] : memref<1x1x64xf32, #tpu.memory_space<vmem>>, vector<1x1x64xf32>
    %102 = vector.shape_cast %101 : vector<1x1x64xf32> to vector<1x64xf32>
    %103 = vector.broadcast %102 : vector<1x64xf32> to vector<8x64xf32>
    %104 = arith.addf %100, %103 : vector<8x64xf32>
    %cst_45 = arith.constant 5.000000e-01 : f32
    %105 = vector.broadcast %cst_45 : f32 to vector<8x64xf32>
    %106 = arith.mulf %105, %104 : vector<8x64xf32>
    %cst_46 = arith.constant 4.471500e-02 : f32
    %107 = vector.broadcast %cst_46 : f32 to vector<8x64xf32>
    %108 = arith.mulf %107, %104 : vector<8x64xf32>
    %109 = arith.mulf %108, %104 : vector<8x64xf32>
    %110 = arith.mulf %109, %104 : vector<8x64xf32>
    %111 = arith.addf %104, %110 : vector<8x64xf32>
    %cst_47 = arith.constant 0.797884583 : f32
    %112 = vector.broadcast %cst_47 : f32 to vector<8x64xf32>
    %113 = arith.mulf %112, %111 : vector<8x64xf32>
    %114 = math.tanh %113 : vector<8x64xf32>
    %cst_48 = arith.constant 1.000000e+00 : f32
    %115 = vector.broadcast %cst_48 : f32 to vector<8x64xf32>
    %116 = arith.addf %115, %114 : vector<8x64xf32>
    %117 = arith.mulf %106, %116 : vector<8x64xf32>
    %c0_49 = arith.constant 0 : index
    %c0_50 = arith.constant 0 : index
    %c0_51 = arith.constant 0 : index
    %118 = vector.load %arg13[%c0_49, %c0_50, %c0_51] : memref<1x64x32xbf16, #tpu.memory_space<vmem>>, vector<1x64x32xbf16>
    %119 = vector.shape_cast %118 : vector<1x64x32xbf16> to vector<64x32xbf16>
    %120 = arith.truncf %117 : vector<8x64xf32> to vector<8x64xbf16>
    %cst_52 = arith.constant dense<0.000000e+00> : vector<8x32xf32>
    %121 = tpu.matmul %120, %119, %cst_52 {dimension_numbers = #tpu.dot_dimension_numbers<[1], [0], [0], [1], [0, 0, 1, 1], [], []>} : vector<8x64xbf16>, vector<64x32xbf16>, vector<8x32xf32> -> vector<8x32xf32>
    %c0_53 = arith.constant 0 : index
    %c0_54 = arith.constant 0 : index
    %c0_55 = arith.constant 0 : index
    %122 = vector.load %arg14[%c0_53, %c0_54, %c0_55] : memref<1x1x32xf32, #tpu.memory_space<vmem>>, vector<1x1x32xf32>
    %123 = vector.shape_cast %122 : vector<1x1x32xf32> to vector<1x32xf32>
    %124 = vector.broadcast %123 : vector<1x32xf32> to vector<8x32xf32>
    %125 = arith.addf %121, %124 : vector<8x32xf32>
    %126 = arith.addf %96, %125 : vector<8x32xf32>
    %c0_56 = arith.constant 0 : index
    %c0_57 = arith.constant 0 : index
    %c0_58 = arith.constant 0 : index
    %127 = vector.load %arg15[%c0_56, %c0_57, %c0_58] : memref<1x1x32xf32, #tpu.memory_space<vmem>>, vector<1x1x32xf32>
    %128 = vector.shape_cast %127 : vector<1x1x32xf32> to vector<1x32xf32>
    %c0_59 = arith.constant 0 : index
    %c0_60 = arith.constant 0 : index
    %c0_61 = arith.constant 0 : index
    %129 = vector.load %arg16[%c0_59, %c0_60, %c0_61] : memref<1x1x32xf32, #tpu.memory_space<vmem>>, vector<1x1x32xf32>
    %130 = vector.shape_cast %129 : vector<1x1x32xf32> to vector<1x32xf32>
    %cst_62 = arith.constant dense<0.000000e+00> : vector<8xf32>
    %131 = vector.multi_reduction <add>, %126, %cst_62 [1] : vector<8x32xf32> to vector<8xf32>
    %132 = vector.shape_cast %131 : vector<8xf32> to vector<8x1xf32>
    %cst_63 = arith.constant 3.200000e+01 : f32
    %133 = vector.broadcast %cst_63 : f32 to vector<8x1xf32>
    %134 = arith.divf %132, %133 : vector<8x1xf32>
    %135 = vector.broadcast %134 : vector<8x1xf32> to vector<8x32xf32>
    %136 = arith.subf %126, %135 : vector<8x32xf32>
    %137 = arith.mulf %136, %136 : vector<8x32xf32>
    %cst_64 = arith.constant dense<0.000000e+00> : vector<8xf32>
    %138 = vector.multi_reduction <add>, %137, %cst_64 [1] : vector<8x32xf32> to vector<8xf32>
    %139 = vector.shape_cast %138 : vector<8xf32> to vector<8x1xf32>
    %cst_65 = arith.constant 3.200000e+01 : f32
    %140 = vector.broadcast %cst_65 : f32 to vector<8x1xf32>
    %141 = arith.divf %139, %140 : vector<8x1xf32>
    %cst_66 = arith.constant 9.99999996E-13 : f32
    %142 = vector.broadcast %cst_66 : f32 to vector<8x1xf32>
    %143 = arith.addf %141, %142 : vector<8x1xf32>
    %144 = math.rsqrt %143 : vector<8x1xf32>
    %145 = vector.broadcast %134 : vector<8x1xf32> to vector<8x32xf32>
    %146 = arith.subf %126, %145 : vector<8x32xf32>
    %147 = vector.broadcast %144 : vector<8x1xf32> to vector<8x32xf32>
    %148 = arith.mulf %146, %147 : vector<8x32xf32>
    %149 = vector.broadcast %128 : vector<1x32xf32> to vector<8x32xf32>
    %150 = arith.mulf %148, %149 : vector<8x32xf32>
    %151 = vector.broadcast %130 : vector<1x32xf32> to vector<8x32xf32>
    %152 = arith.addf %150, %151 : vector<8x32xf32>
    %c0_67 = arith.constant 0 : index
    %c0_68 = arith.constant 0 : index
    %153 = vector.load %arg21[%c0_67, %c0_68] : memref<8x32xf32, #tpu.memory_space<vmem>>, vector<8x32xf32>
    tpu.vector_store %arg21[%c0_67, %c0_68], %152 {strides = array<i32>} : memref<8x32xf32, #tpu.memory_space<vmem>>, vector<8x32xf32>,
    %c1_i32 = arith.constant 1 : i32
    %154 = arith.cmpi eq, %arg1, %c1_i32 : i32
    %155 = arith.extui %154 : i1 to i32
    %c0_i32_69 = arith.constant 0 : i32
    %156 = arith.cmpi ne, %155, %c0_i32_69 : i32
    scf.if %156 {
      %c0_70 = arith.constant 0 : index
      %c0_71 = arith.constant 0 : index
      %157 = vector.load %arg17[%c0_70, %c0_71] : memref<32x64xbf16, #tpu.memory_space<vmem>>, vector<32x64xbf16>
      %158 = arith.truncf %152 : vector<8x32xf32> to vector<8x32xbf16>
      %cst_72 = arith.constant dense<0.000000e+00> : vector<8x64xf32>
      %159 = tpu.matmul %158, %157, %cst_72 {dimension_numbers = #tpu.dot_dimension_numbers<[1], [0], [0], [1], [0, 0, 1, 1], [], []>} : vector<8x32xbf16>, vector<32x64xbf16>, vector<8x64xf32> -> vector<8x64xf32>
      %c0_73 = arith.constant 0 : index
      %c0_74 = arith.constant 0 : index
      %160 = vector.load %arg18[%c0_73, %c0_74] : memref<1x64xf32, #tpu.memory_space<vmem>>, vector<1x64xf32>
      %161 = vector.broadcast %160 : vector<1x64xf32> to vector<8x64xf32>
      %162 = arith.addf %159, %161 : vector<8x64xf32>
      %cst_75 = arith.constant dense<0xFF800000> : vector<8xf32>
      %163 = vector.multi_reduction <maximumf>, %162, %cst_75 [1] : vector<8x64xf32> to vector<8xf32>
      %164 = vector.shape_cast %163 : vector<8xf32> to vector<8x1xf32>
      %165 = vector.broadcast %164 : vector<8x1xf32> to vector<8x64xf32>
      %166 = arith.subf %162, %165 : vector<8x64xf32>
      %167 = math.exp %166 : vector<8x64xf32>
      %cst_76 = arith.constant dense<0.000000e+00> : vector<8xf32>
      %168 = vector.multi_reduction <add>, %167, %cst_76 [1] : vector<8x64xf32> to vector<8xf32>
      %169 = vector.shape_cast %168 : vector<8xf32> to vector<8x1xf32>
      %170 = math.log %169 : vector<8x1xf32>
      %171 = vector.broadcast %170 : vector<8x1xf32> to vector<8x64xf32>
      %172 = arith.subf %166, %171 : vector<8x64xf32>
      %c0_77 = arith.constant 0 : index
      %c0_78 = arith.constant 0 : index
      %c0_79 = arith.constant 0 : index
      %173 = vector.load %arg19[%c0_77, %c0_78, %c0_79] : memref<1x8x1xi32, #tpu.memory_space<vmem>>, vector<1x8x1xi32>
      %174 = vector.shape_cast %173 : vector<1x8x1xi32> to vector<8x1xi32>
      %175 = tpu.iota {dimensions = array<i32: 1>} : vector<8x64xi32>
      %176 = vector.broadcast %174 : vector<8x1xi32> to vector<8x64xi32>
      %177 = arith.cmpi eq, %175, %176 : vector<8x64xi32>
      %cst_80 = arith.constant 0.000000e+00 : f32
      %178 = vector.broadcast %cst_80 : f32 to vector<8x64xf32>
      %179 = arith.select %177, %172, %178 : vector<8x64xi1>, vector<8x64xf32>
      %cst_81 = arith.constant dense<0.000000e+00> : vector<8xf32>
      %180 = vector.multi_reduction <add>, %179, %cst_81 [1] : vector<8x64xf32> to vector<8xf32>
      %181 = vector.shape_cast %180 : vector<8xf32> to vector<8x1xf32>
      %cst_82 = arith.constant 0.000000e+00 : f32
      %182 = vector.broadcast %cst_82 : f32 to vector<8x1xf32>
      %183 = arith.subf %182, %181 : vector<8x1xf32>
      %184 = vector.shape_cast %183 : vector<8x1xf32> to vector<1x8x1xf32>
      %cst_83 = arith.constant dense<0.000000e+00> : vector<1xf32>
      %185 = vector.multi_reduction <add>, %184, %cst_83 [1, 2] : vector<1x8x1xf32> to vector<1xf32>
      %186 = vector.shape_cast %185 : vector<1xf32> to vector<1x1x1xf32>
      %187 = vector.extract %186[0, 0, 0] : f32 from vector<1x1x1xf32>
      %188 = vector.broadcast %187 : f32 to vector<1x1xf32>
      %cst_84 = arith.constant 8.000000e+00 : f32
      %189 = vector.broadcast %cst_84 : f32 to vector<1x1xf32>
      %190 = arith.divf %188, %189 : vector<1x1xf32>
      %c0_85 = arith.constant 0 : index
      %c0_86 = arith.constant 0 : index
      %c0_87 = arith.constant 0 : index
      %191 = vector.load %arg20[%c0_85, %c0_86, %c0_87] : memref<1x1x1xf32, #tpu.memory_space<vmem>>, vector<1x1x1xf32>
      %192 = vector.shape_cast %191 : vector<1x1x1xf32> to vector<1x1xf32>
      %193 = vector.shape_cast %190 : vector<1x1xf32> to vector<1x1x1xf32>
      tpu.vector_store %arg20[%c0_85, %c0_86, %c0_87], %193 {strides = array<i32>} : memref<1x1x1xf32, #tpu.memory_space<vmem>>, vector<1x1x1xf32>,
    } else {
    }
    return
  }
  func.func @transform_0(%arg0: i32, %arg1: i32) -> (i32, i32, i32) {
    %c0_i32 = arith.constant 0 : i32
    %c0_i32_0 = arith.constant 0 : i32
    %c0_i32_1 = arith.constant 0 : i32
    return %arg0, %c0_i32, %c0_i32_0 : i32, i32, i32
  }
  func.func @transform_1(%arg0: i32, %arg1: i32) -> (i32, i32) {
    %c0_i32 = arith.constant 0 : i32
    %c0_i32_0 = arith.constant 0 : i32
    %c0_i32_1 = arith.constant 0 : i32
    return %c0_i32, %c0_i32_0 : i32, i32
  }
  func.func @transform_2(%arg0: i32, %arg1: i32) -> (i32, i32) {
    %c0_i32 = arith.constant 0 : i32
    %c0_i32_0 = arith.constant 0 : i32
    %c0_i32_1 = arith.constant 0 : i32
    return %c0_i32, %c0_i32_0 : i32, i32
  }
  func.func @transform_3(%arg0: i32, %arg1: i32) -> (i32, i32, i32) {
    %c0_i32 = arith.constant 0 : i32
    %c0_i32_0 = arith.constant 0 : i32
    %c0_i32_1 = arith.constant 0 : i32
    return %arg1, %c0_i32, %c0_i32_0 : i32, i32, i32
  }
  func.func @transform_4(%arg0: i32, %arg1: i32) -> (i32, i32, i32) {
    %c0_i32 = arith.constant 0 : i32
    %c0_i32_0 = arith.constant 0 : i32
    %c0_i32_1 = arith.constant 0 : i32
    return %arg1, %c0_i32, %c0_i32_0 : i32, i32, i32
  }
  func.func @transform_5(%arg0: i32, %arg1: i32) -> (i32, i32, i32) {
    %c0_i32 = arith.constant 0 : i32
    %c0_i32_0 = arith.constant 0 : i32
    %c0_i32_1 = arith.constant 0 : i32
    return %arg1, %c0_i32, %c0_i32_0 : i32, i32, i32
  }
  func.func @transform_6(%arg0: i32, %arg1: i32) -> (i32, i32, i32) {
    %c0_i32 = arith.constant 0 : i32
    %c0_i32_0 = arith.constant 0 : i32
    %c0_i32_1 = arith.constant 0 : i32
    return %arg1, %c0_i32, %c0_i32_0 : i32, i32, i32
  }
  func.func @transform_7(%arg0: i32, %arg1: i32) -> (i32, i32, i32) {
    %c0_i32 = arith.constant 0 : i32
    %c0_i32_0 = arith.constant 0 : i32
    %c0_i32_1 = arith.constant 0 : i32
    return %arg1, %c0_i32, %c0_i32_0 : i32, i32, i32
  }
  func.func @transform_8(%arg0: i32, %arg1: i32) -> (i32, i32, i32) {
    %c0_i32 = arith.constant 0 : i32
    %c0_i32_0 = arith.constant 0 : i32
    %c0_i32_1 = arith.constant 0 : i32
    return %arg1, %c0_i32, %c0_i32_0 : i32, i32, i32
  }
  func.func @transform_9(%arg0: i32, %arg1: i32) -> (i32, i32, i32) {
    %c0_i32 = arith.constant 0 : i32
    %c0_i32_0 = arith.constant 0 : i32
    %c0_i32_1 = arith.constant 0 : i32
    return %arg1, %c0_i32, %c0_i32_0 : i32, i32, i32
  }
  func.func @transform_10(%arg0: i32, %arg1: i32) -> (i32, i32, i32) {
    %c0_i32 = arith.constant 0 : i32
    %c0_i32_0 = arith.constant 0 : i32
    %c0_i32_1 = arith.constant 0 : i32
    return %arg1, %c0_i32, %c0_i32_0 : i32, i32, i32
  }
  func.func @transform_11(%arg0: i32, %arg1: i32) -> (i32, i32, i32) {
    %c0_i32 = arith.constant 0 : i32
    %c0_i32_0 = arith.constant 0 : i32
    %c0_i32_1 = arith.constant 0 : i32
    return %arg1, %c0_i32, %c0_i32_0 : i32, i32, i32
  }
  func.func @transform_12(%arg0: i32, %arg1: i32) -> (i32, i32, i32) {
    %c0_i32 = arith.constant 0 : i32
    %c0_i32_0 = arith.constant 0 : i32
    %c0_i32_1 = arith.constant 0 : i32
    return %arg1, %c0_i32, %c0_i32_0 : i32, i32, i32
  }
  func.func @transform_13(%arg0: i32, %arg1: i32) -> (i32, i32, i32) {
    %c0_i32 = arith.constant 0 : i32
    %c0_i32_0 = arith.constant 0 : i32
    %c0_i32_1 = arith.constant 0 : i32
    return %arg1, %c0_i32, %c0_i32_0 : i32, i32, i32
  }
  func.func @transform_14(%arg0: i32, %arg1: i32) -> (i32, i32, i32) {
    %c0_i32 = arith.constant 0 : i32
    %c0_i32_0 = arith.constant 0 : i32
    %c0_i32_1 = arith.constant 0 : i32
    return %arg1, %c0_i32, %c0_i32_0 : i32, i32, i32
  }
  func.func @transform_15(%arg0: i32, %arg1: i32) -> (i32, i32) {
    %c0_i32 = arith.constant 0 : i32
    %c0_i32_0 = arith.constant 0 : i32
    %c0_i32_1 = arith.constant 0 : i32
    return %c0_i32, %c0_i32_0 : i32, i32
  }
  func.func @transform_16(%arg0: i32, %arg1: i32) -> (i32, i32) {
    %c0_i32 = arith.constant 0 : i32
    %c0_i32_0 = arith.constant 0 : i32
    %c0_i32_1 = arith.constant 0 : i32
    return %c0_i32, %c0_i32_0 : i32, i32
  }
  func.func @transform_17(%arg0: i32, %arg1: i32) -> (i32, i32, i32) {
    %c0_i32 = arith.constant 0 : i32
    %c0_i32_0 = arith.constant 0 : i32
    %c0_i32_1 = arith.constant 0 : i32
    return %arg0, %c0_i32, %c0_i32_0 : i32, i32, i32
  }
  func.func @transform_18(%arg0: i32, %arg1: i32) -> (i32, i32, i32) {
    %c0_i32 = arith.constant 0 : i32
    %c0_i32_0 = arith.constant 0 : i32
    %c0_i32_1 = arith.constant 0 : i32
    return %arg0, %c0_i32, %c0_i32_0 : i32, i32, i32
  }
}

</mosaic_0001>

<bundles_post_ra>
// kernel: tpu_custom_call.1
= control target key start
LH: loop header
LB: loop body
LE: loop exit
PB: predicated region body
PF: predicated region fallthrough
CT: control target
= control target key end

     0   :  { %s3152_s0 = inlined_call_operand.vmem [shape: f32[2,8,32], index: 0, kind: input, shape index: {}]   ;;  %s3153_s1 = inlined_call_operand.vmem [shape: f32[1,32], index: 1, kind: input, shape index: {}]   ;;  %s3154_s2 = inlined_call_operand.hbm [shape: f32[1,32], index: 2, kind: input, shape index: {}]   ;;  %s3155_s3 = inlined_call_operand.vmem [shape: bf16[2,32,96], index: 3, kind: input, shape index: {}]   ;;  %s3156_s4 = inlined_call_operand.vmem [shape: f32[2,1,96], index: 4, kind: input, shape index: {}]   ;;  %s3157_s5 = inlined_call_operand.vmem [shape: bf16[2,32,32], index: 5, kind: input, shape index: {}]   ;;  %s3158_s6 = inlined_call_operand.hbm [shape: f32[2,1,32], index: 6, kind: input, shape index: {}]   ;;  %s3159_s7 = inlined_call_operand.hbm [shape: f32[2,1,32], index: 7, kind: input, shape index: {}]   ;;  %s3160_s8 = inlined_call_operand.hbm [shape: f32[2,1,32], index: 8, kind: input, shape index: {}]   ;;  %s3161_s9 = inlined_call_operand.vmem [shape: bf16[2,32,64], index: 9, kind: input, shape index: {}]   ;;  %s3162_s10 = inlined_call_operand.hbm [shape: f32[2,1,64], index: 10, kind: input, shape index: {}]   ;;  %s3163_s11 = inlined_call_operand.vmem [shape: bf16[2,64,32], index: 11, kind: input, shape index: {}]   ;;  %s3164_s12 = inlined_call_operand.hbm [shape: f32[2,1,32], index: 12, kind: input, shape index: {}]   ;;  %s3165_s13 = inlined_call_operand.hbm [shape: f32[2,1,32], index: 13, kind: input, shape index: {}]   ;;  %s3166_s14 = inlined_call_operand.vmem [shape: f32[2,1,32], index: 14, kind: input, shape index: {}]   ;;  %s3167_s15 = inlined_call_operand.vmem [shape: bf16[32,64], index: 15, kind: input, shape index: {}]   ;;  %s3168_s16 = inlined_call_operand.vmem [shape: f32[1,64], index: 16, kind: input, shape index: {}]   ;;  %s3169_s17 = inlined_call_operand.vmem [shape: s32[2,8,1], index: 17, kind: input, shape index: {}]   ;;  %s3170_s18 = inlined_call_operand.vmem [shape: f32[2,1,1], index: 18, kind: output, shape index: {}]  }
   0x1   :  { %3189 = sst [smem:[#allocation24_spill]] %s3152_s0 }
   0x2   :  { %3190 = sst [smem:[#allocation25_spill]] %s3153_s1 }
   0x3   :  { %3191 = sst [smem:[#allocation26_spill]] %s3154_s2 }
   0x4   :  { %3192 = sst [smem:[#allocation27_spill]] %s3155_s3 }
   0x5   :  { %3193 = sst [smem:[#allocation28_spill]] %s3156_s4 }
   0x6   :  { %3194 = sst [smem:[#allocation29_spill]] %s3157_s5 }
   0x7   :  { %3195 = sst [smem:[#allocation30_spill]] %s3158_s6 }
   0x8   :  { %3196 = sst [smem:[#allocation31_spill]] %s3159_s7 }
   0x9   :  { %3197 = sst [smem:[#allocation32_spill]] %s3160_s8 }
   0xa   :  { %3198 = sst [smem:[#allocation33_spill]] %s3161_s9 }
   0xb   :  { %3199 = sst [smem:[#allocation34_spill]] %s3162_s10 }
   0xc   :  { %3200 = sst [smem:[#allocation35_spill]] %s3163_s11 }
   0xd   :  { %3201 = sst [smem:[#allocation36_spill]] %s3164_s12 }
   0xe   :  { %3202 = sst [smem:[#allocation37_spill]] %s3165_s13 }
   0xf   :  { %3203 = sst [smem:[#allocation38_spill]] %s3166_s14 }
  0x10   :  { %3204 = sst [smem:[#allocation39_spill]] %s3167_s15 }
  0x11   :  { %3205 = sst [smem:[#allocation40_spill]] %s3168_s16 }
  0x12   :  { %3206 = sst [smem:[#allocation41_spill]] %s3169_s17 }
  0x13   :  { %23 = vsyncpa [#allocation4], 0 }
  0x14   :  { %24 = vsyncpa [#allocation6], 0 }
  0x15   :  { %26 = vsyncpa [#allocation6 + $0x1], 0 }
  0x16   :  { %27 = vsyncpa [#allocation9], 0 }
  0x17   :  { %29 = vsyncpa [#allocation9 + $0x1], 0 }
  0x18   :  { %30 = vsyncpa [#allocation12], 0 }
  0x19   :  { %32 = vsyncpa [#allocation12 + $0x1], 0  ;;  %s2627_s27 = smov 0   ;;  %s2629_s28 = smov 0  }
  0x1a   :  { %s2631_s29 = smov 0   ;;  %s2633_s30 = smov 0  }
  0x1b   :  { %s2635_s0 = smov 0   ;;  %s2637_s19 = smov 0  }
  0x1c   :  { %s2639_s1 = smov 0   ;;  %s2641_s20 = smov 0  }
  0x1d LB: > { %3207 = sst [smem:[#allocation18_spill]] %s2492_s29  ;;  %s47_s21 = sadd.s32 1, %s2504_s19  ;;  %s2512_s20 = sphi %s2641_s20, %s38_s20   ;;  %s2508_s1 = sphi %s2639_s1, %s3264_s1   ;;  %s2504_s19 = sphi %s2637_s19, %s3263_s19   ;;  %s2500_s0 = sphi %s2635_s0, %s3262_s0   ;;  %s2496_s30 = sphi %s2633_s30, %s3261_s30   ;;  %s2492_s29 = sphi %s2631_s29, %s3260_s29   ;;  %s2488_s28 = sphi %s2629_s28, %s3266_s28   ;;  %s2484_s27 = sphi %s2627_s27, %s3265_s27  }
  0x1e   : > { %3208 = sst [smem:[#allocation19_spill]] %s2504_s19  ;;  %s50_s22 = sadd.s32 1, %s2508_s1 }
  0x1f   : > { %3209 = sst [smem:[#allocation20_spill]] %s2508_s1  ;;  %p48_p0 = scmp.ge.s32.totalorder %s47_s21, 2 }
  0x20   : > { %s203_s2 = sadd.s32 1, %s2492_s29  ;;  %p210_p1 = scmp.ne.s32.totalorder %s2492_s29, %s2488_s28 }
  0x21   : > { %p211_p2 = scmp.eq.s32.totalorder %s2512_s20, 0  ;;  %s3268_s21 = smov (%p48_p0, %s47_s21), 0 }
  0x22   : > { %3210 = sst [smem:[#allocation21_spill]] %s3268_s21  ;;  %s3270_s22 = smov (!%p48_p0, %s50_s22), %s2508_s1 }
  0x23   : > { %s200_s23 = ssub.s32 %s2504_s19, %s3268_s21  ;;  %p2678_p3 = por %p211_p2, %p210_p1 }
  0x24   : > { %p52_p4 = scmp.ge.s32.totalorder %s3270_s22, 2  ;;  %p201_p5 = scmp.eq.s32.totalorder %s200_s23, 0 }
  0x25   : > { %p2114_p6 = scmp.lt.s32.totalorder %s2512_s20, 4  ;;  %s2689_s26 = sand.u32 1, %s2512_s20  }
  0x26   : > { %s3272_s22 = smov (%p52_p4, %s3270_s22), 0  ;;  %s2692_s16 = sand.u32 1, %s2492_s29  }
  0x27   : > { %3212 = sst [smem:[#allocation22_spill]] %s3272_s22  ;;  %s2695_s21 = sshll.u32 %s2504_s19, 4 }
  0x28   : > { %s2686_s25 = scalar_select %p201_p5, %s2492_s29, %s203_s2  }
  0x29   : > { %s594_s1 = scalar_lea.vmem [#allocation5], %s2692_s16  ;;  %s3214_s6 = sld [smem:[#allocation30_spill]] }
  0x2a   : > { %3213 = sst [smem:[#allocation23_spill]] %s2686_s25  ;;  %s601_s15 = sshll.u32 %s594_s1, 4  ;;  %s2704_s15 = int_to_ptr.vmem [resolvable:$true] %s601_s15 }
  0x2b   : > { %p2708_p7 = pnand %p2114_p6, %p2678_p3  ;;  %s3216_s8 = sld [smem:[#allocation32_spill]] }
  0x2c   : > { %s628_s17 = scalar_lea.vmem [#allocation8], %s2692_s16  ;;  %s3177_s25 = scalar_lea.sflag [#allocation6], %s2689_s26 }
  0x2d   : > { %s3215_s2 = scalar_select %p2708_p7, 1, 0 }
  0x2e   : > { %s2719_s23 = sshll.u32 %s628_s17, 4  ;;  %p2726_p9 = pneg %p2708_p7  ;;  %s636_s23 = int_to_ptr.vmem [resolvable:$true] %s2719_s23 }
  0x2f   : > { %s2702_s11 = scalar_lea.hbm %s3214_s6, %s2695_s21  ;;  %s2231_s22 = scalar_lea.hbm %s3214_s6, 32 }
  0x30   : > { %s2226_s29 = scalar_lea.hbm %s2702_s11, 16  ;;  %p2232_p12 = scmp.lt.u32.totalorder %s2702_s11, %s3214_s6 }
  0x31   : > { %s2716_s1 = scalar_lea.hbm %s3216_s8, %s2695_s21  ;;  %p2227_p8 = scmp.ne.s32.totalorder %s2702_s11, %s2226_s29 }
  0x32   : > { %p2233_p13 = scmp.lt.u32.totalorder %s2231_s22, %s2226_s29  ;;  %p2235_p1 = scmp.lt.u32.totalorder %s2226_s29, %s2702_s11 }
  0x33   : > { %p2229_p10 = pnand %p2726_p9, %p2227_p8 }
  0x34   : > { %p2234_p0 = por %p2233_p13, %p2232_p12 }
  0x35   : > { %p2230_p11 = pneg %p2229_p10 }
  0x36   : > { %p2236_p2 = por %p2235_p1, %p2234_p0 }
  0x38   : > { %p2237_p3 = pnand %p2236_p2, %p2230_p11 }
  0x3a   : > { %2240 = shalt.err (!%p2237_p3)
}
  0x3b   : > { %s2241_s17 = scalar_lea.vmem %s2704_s15, 16  ;;  %s2514_s24 = smov [#allocation5]  }
  0x3c   : > { %p2242_p4 = scmp.ne.s32.totalorder %s2704_s15, %s2241_s17  ;;  %s2246_s19 = sshll.u32 %s2514_s24, 4  ;;  %s2247_s19 = int_to_ptr.vmem [resolvable:$false] %s2246_s19 }
  0x3d   : > { %s2248_s5 = scalar_lea.vmem %s2247_s19, 32  ;;  %p2249_p8 = scmp.lt.s32.totalorder %s2704_s15, %s2247_s19 }
  0x3e   : > { %p2244_p5 = pnand %p2242_p4, %p2726_p9  ;;  %p2250_p10 = scmp.lt.s32.totalorder %s2248_s5, %s2241_s17 }
  0x40   : > { %p2245_p6 = pneg %p2244_p5  ;;  %p2251_p12 = por %p2250_p10, %p2249_p8 }
  0x42   : > { %p2252_p13 = pnand %p2251_p12, %p2245_p6 }
  0x44   : > { %2255 = shalt.err (!%p2252_p13)
}
  0x45   : > { %2097 = dma.hbm_to_vmem [thread:$0]  (!%p2708_p7), %s2702_s11, 16, %s2704_s15, %s3177_s25  }
  0x46   : > { %s3180_s9 = scalar_lea.sflag [#allocation9], %s2689_s26  ;;  %s2256_s29 = scalar_lea.hbm %s2716_s1, 16 }
  0x47   : > { %p2257_p11 = scmp.ne.s32.totalorder %s2716_s1, %s2256_s29  ;;  %s2261_s24 = scalar_lea.hbm %s3216_s8, 32 }
  0x48   : > { %p2262_p2 = scmp.lt.u32.totalorder %s2716_s1, %s3216_s8  ;;  %p2263_p3 = scmp.lt.u32.totalorder %s2261_s24, %s2256_s29 }
  0x49   : > { %p2259_p0 = pnand %p2257_p11, %p2726_p9  ;;  %p2265_p5 = scmp.lt.u32.totalorder %s2256_s29, %s2716_s1 }
  0x4a   : > { %p2264_p4 = por %p2263_p3, %p2262_p2 }
  0x4b   : > { %p2260_p1 = pneg %p2259_p0 }
  0x4c   : > { %p2266_p6 = por %p2265_p5, %p2264_p4 }
  0x4e   : > { %p2267_p8 = pnand %p2266_p6, %p2260_p1 }
  0x50   : > { %2270 = shalt.err (!%p2267_p8)
}
  0x51   : > { %s2271_s11 = scalar_lea.vmem %s636_s23, 16  ;;  %s2515_s15 = smov [#allocation8]  }
  0x52   : > { %p2272_p10 = scmp.ne.s32.totalorder %s636_s23, %s2271_s11  ;;  %s2276_s25 = sshll.u32 %s2515_s15, 4  ;;  %s2277_s25 = int_to_ptr.vmem [resolvable:$false] %s2276_s25 }
  0x53   : > { %s2278_s22 = scalar_lea.vmem %s2277_s25, 32  ;;  %p2279_p11 = scmp.lt.s32.totalorder %s636_s23, %s2277_s25 }
  0x54   : > { %p2274_p12 = pnand %p2272_p10, %p2726_p9  ;;  %p2280_p0 = scmp.lt.s32.totalorder %s2278_s22, %s2271_s11 }
  0x56   : > { %p2275_p13 = pneg %p2274_p12  ;;  %p2281_p7 = por %p2280_p0, %p2279_p11 }
  0x58   : > { %p2282_p2 = pnand %p2281_p7, %p2275_p13 }
  0x5a   : > { %2285 = shalt.err (!%p2282_p2)
}
  0x5b   : > { %p3218_p3 = scmp.ne.s32.totalorder %s3215_s2, 0  ;;  %s3219_s12 = sld [smem:[#allocation36_spill]] }
  0x5c   : > { %s678_s25 = scalar_lea.vmem [#allocation11], %s2692_s16  ;;  %s3182_s5 = scalar_lea.sflag [#allocation12], %s2689_s26 }
  0x5d   : > { %2103 = dma.hbm_to_vmem [thread:$0]  (!%p3218_p3), %s2716_s1, 16, %s636_s23, %s3180_s9  }
  0x5e   : > { %s685_s19 = sshll.u32 %s678_s25, 4  ;;  %s686_s19 = int_to_ptr.vmem [resolvable:$true] %s685_s19 }
  0x61   : > { %s2776_s24 = scalar_lea.hbm %s3219_s12, %s2695_s21  ;;  %s2291_s23 = scalar_lea.hbm %s3219_s12, 32 }
  0x62   : > { %s2286_s11 = scalar_lea.hbm %s2776_s24, 16  ;;  %p2292_p5 = scmp.lt.u32.totalorder %s2776_s24, %s3219_s12 }
  0x63   : > { %p2287_p7 = scmp.ne.s32.totalorder %s2776_s24, %s2286_s11  ;;  %p2293_p6 = scmp.lt.u32.totalorder %s2291_s23, %s2286_s11 }
  0x64   : > { %p2295_p10 = scmp.lt.u32.totalorder %s2286_s11, %s2776_s24 }
  0x65   : > { %p2289_p1 = pnand %p2287_p7, %p2726_p9  ;;  %p2294_p8 = por %p2293_p6, %p2292_p5 }
  0x67   : > { %p2290_p4 = pneg %p2289_p1  ;;  %p2296_p12 = por %p2295_p10, %p2294_p8 }
  0x69   : > { %p2297_p13 = pnand %p2296_p12, %p2290_p4 }
  0x6b   : > { %2300 = shalt.err (!%p2297_p13)
}
  0x6c   : > { %s2301_s17 = scalar_lea.vmem %s686_s19, 16  ;;  %s2516_s25 = smov [#allocation11]  }
  0x6d   : > { %p2302_p11 = scmp.ne.s32.totalorder %s686_s19, %s2301_s17  ;;  %s2306_s9 = sshll.u32 %s2516_s25, 4  ;;  %s2307_s9 = int_to_ptr.vmem [resolvable:$false] %s2306_s9 }
  0x6e   : > { %s2308_s15 = scalar_lea.vmem %s2307_s9, 32  ;;  %p2309_p7 = scmp.lt.s32.totalorder %s686_s19, %s2307_s9 }
  0x6f   : > { %p2304_p0 = pnand %p2302_p11, %p2726_p9  ;;  %p2310_p1 = scmp.lt.s32.totalorder %s2308_s15, %s2301_s17 }
  0x71   : > { %p2305_p2 = pneg %p2304_p0  ;;  %p2311_p3 = por %p2310_p1, %p2309_p7 }
  0x73   : > { %p2312_p5 = pnand %p2311_p3, %p2305_p2 }
  0x75   : > { %2315 = shalt.err (!%p2312_p5)
}
  0x76   : > { %p3220_p6 = scmp.ne.s32.totalorder %s3215_s2, 0  ;;  %s3181_s11 = sadd.s32 4294967295, %s2512_s20  }
  0x77   : > { %p216_p4 = scmp.ne.s32.totalorder %s2488_s28, %s2484_s27  ;;  %p2804_p8 = scmp.eq.s32.totalorder %s3181_s11, 0 }
  0x78   : > { %2109 = dma.hbm_to_vmem [thread:$0]  (!%p3220_p6), %s2776_s24, 16, %s686_s19, %s3182_s5  }
  0x79   : > { %s3221_s9 = scalar_select %p2804_p8, 1, 0 }
  0x7a   : > { %p1918_p3 = scmp.ge.s32.totalorder %s2512_s20, 1  ;;  %p529_p10 = scmp.lt.s32.totalorder %s2512_s20, 5 }
  0x7b   : > { %p2812_p12 = por %p2804_p8, %p216_p4  ;;  %s2517_s27 = smov [#allocation3]  }
  0x7c   : > { %p2816_p13 = pnand %p1918_p3, %p529_p10  ;;  %s545_s24 = sshll.u32 %s2517_s27, 4  ;;  %s2820_s24 = int_to_ptr.vmem [resolvable:$true] %s545_s24 }
  0x7d   : > { %s3222_s1 = scalar_select %p2812_p12, 1, 0 }
  0x7e   : > { %s3223_s23 = scalar_select %p2816_p13, 1, 0 }
  0x7f   : > { %p2090_p11 = pneg %p2816_p13  ;;  %s3224_s7 = sld [smem:[#allocation31_spill]] }
  0x80   : > { %s611_s17 = scalar_lea.vmem [#allocation7], %s2692_s16 }
  0x81   : > { %s618_s25 = sshll.u32 %s611_s17, 4  ;;  %p2833_p0 = pnand %p2090_p11, %p2804_p8  ;;  %s619_s25 = int_to_ptr.vmem [resolvable:$true] %s618_s25 }
  0x83   : > { %s3225_s15 = scalar_select %p2833_p0, 1, 0 }
  0x85   : > { %s2828_s29 = scalar_lea.hbm %s3224_s7, %s2695_s21  ;;  %s2321_s11 = scalar_lea.hbm %s3224_s7, 32 }
  0x86   : > { %s2316_s27 = scalar_lea.hbm %s2828_s29, 16  ;;  %p2322_p5 = scmp.lt.u32.totalorder %s2828_s29, %s3224_s7 }
  0x87   : > { %p2317_p2 = scmp.ne.s32.totalorder %s2828_s29, %s2316_s27  ;;  %p2323_p4 = scmp.lt.u32.totalorder %s2321_s11, %s2316_s27 }
  0x88   : > { %p2325_p10 = scmp.lt.u32.totalorder %s2316_s27, %s2828_s29 }
  0x89   : > { %p2319_p7 = pnand %p2317_p2, %p2726_p9  ;;  %p2324_p3 = por %p2323_p4, %p2322_p5 }
  0x8b   : > { %p2320_p1 = pneg %p2319_p7  ;;  %p2326_p11 = por %p2325_p10, %p2324_p3 }
  0x8d   : > { %p2327_p12 = pnand %p2326_p11, %p2320_p1 }
  0x8f   : > { %2330 = shalt.err (!%p2327_p12)
}
  0x90   : > { %s2331_s17 = scalar_lea.vmem %s619_s25, 16  ;;  %s2518_s8 = smov [#allocation7]  }
  0x91   : > { %p2332_p8 = scmp.ne.s32.totalorder %s619_s25, %s2331_s17  ;;  %s2336_s12 = sshll.u32 %s2518_s8, 4  ;;  %s2337_s12 = int_to_ptr.vmem [resolvable:$false] %s2336_s12 }
  0x92   : > { %s2338_s19 = scalar_lea.vmem %s2337_s12, 32  ;;  %p2339_p13 = scmp.lt.s32.totalorder %s619_s25, %s2337_s12 }
  0x93   : > { %p2334_p2 = pnand %p2332_p8, %p2726_p9  ;;  %p2340_p0 = scmp.lt.s32.totalorder %s2338_s19, %s2331_s17 }
  0x95   : > { %p2335_p7 = pneg %p2334_p2  ;;  %p2341_p6 = por %p2340_p0, %p2339_p13 }
  0x97   : > { %p2342_p4 = pnand %p2341_p6, %p2335_p7 }
  0x99   : > { %2345 = shalt.err (!%p2342_p4)
}
  0x9a   : > { %p3226_p5 = scmp.ne.s32.totalorder %s3215_s2, 0  ;;  %s3227_s6 = scalar_lea.sflag [#allocation6], %s2689_s26 }
  0x9b   : > { %s3228_s10 = sld [smem:[#allocation34_spill]]  ;;  %p3230_p8 = scmp.ne.s32.totalorder %s3225_s15, 0 }
  0x9c   : > { %2100 = dma.hbm_to_vmem [thread:$0]  (!%p3226_p5), %s2828_s29, 16, %s619_s25, %s3227_s6  }
  0x9d   : > { %s3229_s12 = sld [smem:[#allocation26_spill]]  ;;  %p2348_p12 = pneg %p3230_p8 }
  0xa1   : > { %s2860_s27 = scalar_lea.hbm %s3228_s10, %s2695_s21 }
  0xa3   : > { %s2346_s17 = scalar_lea.hbm %s3229_s12, 16 }
  0xa4   : > { %p2347_p6 = scmp.ne.s32.totalorder %s3229_s12, %s2346_s17  ;;  %p2353_p1 = scmp.lt.u32.totalorder %s2346_s17, %s3229_s12 }
  0xa6   : > { %p2349_p13 = pnand %p2348_p12, %p2347_p6 }
  0xa8   : > { %p2350_p0 = pneg %p2349_p13 }
  0xaa   : > { %p2355_p3 = pnand %p2353_p1, %p2350_p0 }
  0xac   : > { %2358 = shalt.err (!%p2355_p3)
}
  0xad   : > { %s2359_s29 = scalar_lea.vmem %s2820_s24, 16  ;;  %s2366_s7 = scalar_lea.vmem %s2820_s24, 32 }
  0xae   : > { %p2360_p10 = scmp.ne.s32.totalorder %s2820_s24, %s2359_s29  ;;  %p2367_p7 = scmp.lt.s32.totalorder %s2820_s24, %s2820_s24 }
  0xaf   : > { %p2368_p4 = scmp.lt.s32.totalorder %s2366_s7, %s2359_s29 }
  0xb0   : > { %p2362_p11 = pnand %p2360_p10, %p2348_p12 }
  0xb1   : > { %p2369_p6 = por %p2368_p4, %p2367_p7 }
  0xb2   : > { %p2363_p2 = pneg %p2362_p11 }
  0xb4   : > { %p2370_p13 = pnand %p2369_p6, %p2363_p2 }
  0xb6   : > { %2373 = shalt.err (!%p2370_p13)
}
  0xb7   : > { %2093 = dma.hbm_to_vmem [thread:$0]  (!%p3230_p8), %s3229_s12, 16, %s2820_s24, [#allocation4]  }
  0xb8   : > { %s653_s25 = scalar_lea.vmem [#allocation10], %s2692_s16  ;;  %s3231_s13 = sld [smem:[#allocation37_spill]] }
  0xb9   : > { %s660_s6 = sshll.u32 %s653_s25, 4  ;;  %s2374_s15 = scalar_lea.hbm %s2860_s27, 16  ;;  %s661_s6 = int_to_ptr.vmem [resolvable:$true] %s660_s6 }
  0xba   : > { %p2375_p12 = scmp.ne.s32.totalorder %s2860_s27, %s2374_s15  ;;  %s2379_s19 = scalar_lea.hbm %s3228_s10, 32 }
  0xbb   : > { %p2380_p8 = scmp.lt.u32.totalorder %s2860_s27, %s3228_s10  ;;  %p2381_p3 = scmp.lt.u32.totalorder %s2379_s19, %s2374_s15 }
  0xbc   : > { %p2377_p0 = pnand %p2375_p12, %p2726_p9  ;;  %p2383_p11 = scmp.lt.u32.totalorder %s2374_s15, %s2860_s27 }
  0xbd   : > { %p2382_p10 = por %p2381_p3, %p2380_p8 }
  0xbe   : > { %s2889_s8 = scalar_lea.hbm %s3231_s13, %s2695_s21  ;;  %p2378_p1 = pneg %p2377_p0 }
  0xbf   : > { %p2384_p2 = por %p2383_p11, %p2382_p10 }
  0xc1   : > { %p2385_p7 = pnand %p2384_p2, %p2378_p1 }
  0xc3   : > { %2388 = shalt.err (!%p2385_p7)
}
  0xc4   : > { %s2389_s21 = scalar_lea.vmem %s661_s6, 16  ;;  %s2519_s24 = smov [#allocation10]  }
  0xc5   : > { %p2390_p4 = scmp.ne.s32.totalorder %s661_s6, %s2389_s21  ;;  %s2394_s3 = sshll.u32 %s2519_s24, 4  ;;  %s2395_s3 = int_to_ptr.vmem [resolvable:$false] %s2394_s3 }
  0xc6   : > { %s2396_s4 = scalar_lea.vmem %s2395_s3, 32  ;;  %p2397_p12 = scmp.lt.s32.totalorder %s661_s6, %s2395_s3 }
  0xc7   : > { %p2392_p6 = pnand %p2390_p4, %p2726_p9  ;;  %p2398_p0 = scmp.lt.s32.totalorder %s2396_s4, %s2389_s21 }
  0xc9   : > { %p2393_p13 = pneg %p2392_p6  ;;  %p2399_p5 = por %p2398_p0, %p2397_p12 }
  0xcb   : > { %p2400_p3 = pnand %p2399_p5, %p2393_p13 }
  0xcd   : > { %2403 = shalt.err (!%p2400_p3)
}
  0xce   : > { %p3232_p8 = scmp.ne.s32.totalorder %s3215_s2, 0  ;;  %s3233_s25 = scalar_lea.sflag [#allocation9], %s2689_s26 }
  0xcf   : > { %s695_s5 = scalar_lea.vmem [#allocation13], %s2692_s16  ;;  %s2404_s15 = scalar_lea.hbm %s2889_s8, 16 }
  0xd0   : > { %2106 = dma.hbm_to_vmem [thread:$0]  (!%p3232_p8), %s2860_s27, 16, %s661_s6, %s3233_s25  }
  0xd1   : > { %s702_s11 = sshll.u32 %s695_s5, 4  ;;  %p2405_p1 = scmp.ne.s32.totalorder %s2889_s8, %s2404_s15  ;;  %s703_s11 = int_to_ptr.vmem [resolvable:$true] %s702_s11 }
  0xd2   : > { %s2409_s19 = scalar_lea.hbm %s3231_s13, 32  ;;  %p2410_p11 = scmp.lt.u32.totalorder %s2889_s8, %s3231_s13 }
  0xd3   : > { %p2407_p5 = pnand %p2405_p1, %p2726_p9  ;;  %p2411_p2 = scmp.lt.u32.totalorder %s2409_s19, %s2404_s15 }
  0xd4   : > { %p2413_p4 = scmp.lt.u32.totalorder %s2404_s15, %s2889_s8 }
  0xd5   : > { %p2408_p10 = pneg %p2407_p5  ;;  %p2412_p7 = por %p2411_p2, %p2410_p11 }
  0xd7   : > { %p2414_p6 = por %p2413_p4, %p2412_p7 }
  0xd9   : > { %p2415_p13 = pnand %p2414_p6, %p2408_p10 }
  0xdb   : > { %2418 = shalt.err (!%p2415_p13)
}
  0xdc   : > { %s2419_s16 = scalar_lea.vmem %s703_s11, 16  ;;  %s2520_s27 = smov [#allocation13]  }
  0xdd   : > { %p2420_p12 = scmp.ne.s32.totalorder %s703_s11, %s2419_s16  ;;  %s2424_s6 = sshll.u32 %s2520_s27, 4  ;;  %s2425_s6 = int_to_ptr.vmem [resolvable:$false] %s2424_s6 }
  0xde   : > { %s2426_s21 = scalar_lea.vmem %s2425_s6, 32  ;;  %p2427_p1 = scmp.lt.s32.totalorder %s703_s11, %s2425_s6 }
  0xdf   : > { %p2422_p0 = pnand %p2420_p12, %p2726_p9  ;;  %p2428_p5 = scmp.lt.s32.totalorder %s2426_s21, %s2419_s16 }
  0xe1   : > { %p2423_p3 = pneg %p2422_p0  ;;  %p2429_p8 = por %p2428_p5, %p2427_p1 }
  0xe3   : > { %p2430_p2 = pnand %p2429_p8, %p2423_p3 }
  0xe5   : > { %2433 = shalt.err (!%p2430_p2)
}
  0xe6   : > { %p3234_p11 = scmp.ne.s32.totalorder %s3215_s2, 0  ;;  %s3235_s24 = scalar_lea.sflag [#allocation12], %s2689_s26 }
  0xe7   : > { %p3236_p10 = scmp.ne.s32.totalorder %s3223_s23, 0 }
  0xe8   : > { %2112 = dma.hbm_to_vmem [thread:$0]  (!%p3234_p11), %s2889_s8, 16, %s703_s11, %s3235_s24  }
  0xe9   : > { %724 = sbr.rel (%p3236_p10) target bundleno = 3980 (0xf8c), region = 92  ;;  %p3237_p9 = scmp.ne.s32.totalorder (!%p3236_p10), %s3221_s9, 0 }
  0xf0   : > { %2467 = dma.done.wait (%p3237_p9), [#allocation4], 16  }
  0xf1   : > { %2469 = vsyncadd (%p3237_p9), [#allocation4], 4294967280  ;;  %s3238_s14 = sadd.s32 4294967295, %s2512_s20   ;;  %s2939_s4 = sand.u32 1, %s2488_s28  }
  0xf2   : > { %s730_s3 = sand.u32 1, %s3238_s14   ;;  %p3239_p8 = scmp.ne.s32.totalorder %s3222_s1, 0 }
  0xf3   : > { %s731_s26 = scalar_lea.sflag [#allocation6], %s730_s3 }
  0xf4   : > { %2471 = dma.done.wait (%p3239_p8), %s731_s26, 32  }
  0xf5   : > { %2473 = vsyncadd (%p3239_p8), %s731_s26, 4294967264  ;;  %s747_s23 = scalar_lea.sflag [#allocation9], %s730_s3 }
  0xf6   : > { %2475 = dma.done.wait (%p3239_p8), %s747_s23, 32  }
  0xf7   : > { %2477 = vsyncadd (%p3239_p8), %s747_s23, 4294967264  ;;  %s763_s5 = scalar_lea.sflag [#allocation12], %s730_s3 }
  0xf8   : > { %2479 = dma.done.wait (%p3239_p8), %s763_s5, 32  }
  0xf9   : > { %2481 = vsyncadd (%p3239_p8), %s763_s5, 4294967264  ;;  %p877_p7 = scmp.lt.s32.totalorder %s2500_s0, 1  ;;  %p881_p4 = scmp.lt.s32.totalorder %s2496_s30, 1 }
  0xfa   : > { %s3240_s16 = sld [smem:[#allocation24_spill]]  ;;  %s3241_s14 = sld [smem:[#allocation27_spill]] }
  0xfb   : > { %s3274_s0 = smov (!%p877_p7, %s2500_s0), 1  ;;  %s3242_s5 = sld [smem:[#allocation28_spill]] }
  0xfc   : > { %s2964_s15 = scalar_select %p881_p4, %s2496_s30, 1 }
  0xfd   : > { %s1929_s22 = sshll.u32 %s3274_s0, 3  ;;  %s3243_s9 = sld [smem:[#allocation29_spill]] }
  0xfe   : > { %s1975_s6 = sshll.u32 %s2964_s15, 4  ;;  %s3244_s19 = sld [smem:[#allocation33_spill]] }
  0xff   : > { %s1978_s7 = sshll.u32 %s2964_s15, 5  ;;  %s3245_s21 = sld [smem:[#allocation38_spill]] }
 0x100   : > { %s880_s27 = scalar_lea.vmem %s3240_s16, %s1929_s22  ;;  %s2978_s3 = scalar_lea.vmem %s3241_s14, %s1975_s6 }
 0x101   : > { %s888_s11 = scalar_lea.vmem %s3242_s5, %s2964_s15  ;;  %s3246_s13 = sld [smem:[#allocation35_spill]] }
 0x102   : > { %s3247_s8 = sld [smem:[#allocation41_spill]]  ;;  %s773_s25 = scalar_lea.vmem [#allocation13], %s2939_s4 }
 0x103   : > { %s2987_s2 = scalar_lea.vmem %s3243_s9, %s1975_s6  ;;  %p1939_p6 = scmp.ne.s32.totalorder %s2496_s30, 0 }
 0x104   : > { %s2992_s29 = scalar_lea.vmem %s3244_s19, %s1975_s6  ;;  %v919_v0 = vld [vmem:[%s880_s27] sm:$0xff] (!%p1939_p6)  ;;  %vm922_vm0 = vcmask (!%p1939_p6), 261120   ;;  %s3248_s12 = sld [smem:[#allocation25_spill]] (!%p1939_p6)  ;;  %v1941_v13 = vld [vmem:[#allocation3] ss:$0 sm:$0xff] (!%p1939_p6) }
 0x105   : > { %s906_s24 = scalar_lea.vmem %s3245_s21, %s2964_s15  ;;  %918 = sbr.rel (%p1939_p6) target bundleno = 575 (0x23f), region = 124  ;;  %v923_v1 = vsel (!%p1939_p6), %vm922_vm0, %v919_v0, 0.0 }
 0x106   : > { %924 = vadd.xlane.f32.xlu0 (!%p1939_p6), %v923_v1 }
 0x107   : > { %s3002_s26 = scalar_lea.vmem %s3246_s13, %s1978_s7 }
 0x108   : > { %s3007_s9 = scalar_lea.vmem %s3247_s8, %s1929_s22 }
 0x10a   : > { %v1940_v11 = vld [vmem:[%s3248_s12] ss:$0 sm:$0xff] (!%p1939_p6) }
 0x193   : > { %v925_v2 = vpop.xlane.xlu0 %924 }
 0x194   : > { %v927_v3 = vmul.f32 0.03125, %v925_v2 }
 0x196   : > { %v928_v4 = vsub.f32 %v919_v0, %v927_v3 }
 0x198   : > { %v929_v5 = vmul.f32 %v928_v4, %v928_v4 }
 0x19a   : > { %v930_v6 = vsel %vm922_vm0, %v929_v5, 0.0 }
 0x19b   : > { %931 = vadd.xlane.f32.xlu0 %v930_v6 }
 0x228   : > { %v932_v7 = vpop.xlane.xlu0 %931 }
 0x229   : > { %v933_v8 = vmul.f32 0.03125, %v932_v7 }
 0x22b   : > { %v934_v9 = vadd.f32 1e-12, %v933_v8 }
 0x22d   : > { %2192 = vrsqrt.f32 %v934_v9 }
 0x237   : > { %v2193_v10 = vpop.eup %2192 }
 0x238   : > { %v936_v12 = vmul.f32 %v2193_v10, %v928_v4 }
 0x23a   : > { %v943_v14 = vmul.f32 %v1940_v11, %v936_v12 }
 0x23c   : > { %v950_v15 = vadd.f32 %v1941_v13, %v943_v14 }
 0x23e   : > { %951 = vst.msk [vmem:[#allocation2] sm:$0xff] %vm922_vm0, %v950_v15 }
 0x23f PF: > { %v2194_v16 = vld [vmem:[%s2978_s3] sm:$0xff]   ;;  %v2521_v17 = vmov 0.0   ;;  %v2195_v18 = vld [vmem:[%s2978_s3 + $0x8] sm:$0xff]   ;;  %vm2522_vm1 = vmmov 0   ;;  %vm981_vm2 = vcmask 261120   ;;  %s2523_s6 = smov 112   ;;  %v1025_v33 = vlaneseq }
 0x240   : > { %2004 = vmatprep.subr.bf16.mxu0 %v2521_v17  ;;  %2012 = vmatprep.subr.bf16.mxu1 %v2521_v17  ;;  %v1942_v21 = vld [vmem:[%s888_s11] ss:$0 sm:$0xff]  ;;  %s2524_s3 = smov 96   ;;  %s2525_s1 = smov 80   ;;  %vm1034_vm3 = vcmask 130048   ;;  %vm1083_vm5 = vcmask 64512  }
 0x241   : > { %2005 = vmatpush3.bf16.msra.mxu0 %v2194_v16  ;;  %2008 = vmatprep.mubr.msk.bf16.mxu0 %vm2522_vm1, %v2521_v17  ;;  %v1026_v34 = vshrl.u32 %v1025_v33, 7  ;;  %v3049_v35 = vand.u32 127, %v1025_v33  ;;  %s2526_s11 = smov 64   ;;  %s2527_s17 = smov 48   ;;  %vm1101_vm6 = vcmask 1043456   ;;  %v2196_v8 = vld [vmem:[%s2987_s2] sm:$0xff]  }
 0x242   : > { %2006 = vmatprep.subr.bf16.mxu0 %v2521_v17  ;;  %2014 = vmatprep.mubr.msk.bf16.mxu1 %vm2522_vm1, %v2521_v17  ;;  %v2197_v9 = vld [vmem:[%s2987_s2 + $0x8] sm:$0xff]   ;;  %s2528_s7 = smov 16   ;;  %s3250_s2 = scalar_lea.vmem [#allocation5], %s2939_s4  ;;  %vm1472_vm7 = vcmask 523264  }
 0x243   : > { %vm1029_vm4 = vcmp.le.s32.totalorder %v3049_v35, %v1026_v34  ;;  %s3251_s16 = scalar_lea.vmem [#allocation7], %s2939_s4  ;;  %s3252_s21 = scalar_lea.vmem [#allocation8], %s2939_s4 }
 0x244   : > { %s3254_s14 = scalar_lea.vmem [#allocation11], %s2939_s4  ;;  %p1968_p13 = scmp.ne.s32.totalorder %s2496_s30, 1 }
 0x245   : > { %v3023_v19 = vld [vmem:[#allocation2] sm:$0xff]  ;;  %2007 = vmatpush3.bf16.msra.mxu0 %v2195_v18  ;;  %s3256_s13 = sld [smem:[#allocation39_spill]] (!%p1968_p13)  ;;  %vm2530_vm8 = vmmov (!%p1968_p13), 0   ;;  %vm1640_vm10 = vcmask (!%p1968_p13), 7168   ;;  %vm1654_vm11 = vcmask (!%p1968_p13), 0   ;;  %s3258_s19 = scalar_lea.vmem (!%p1968_p13), %s3170_s18, %s3274_s0 }
 0x246   : > { %v961_v20 = vpack.c.bf16 %v3023_v19, %v3023_v19  ;;  %2018 = vmatprep.subr.bf16.mxu0 %v2521_v17 }
 0x248   : > { %2009 = vmatmul.mubr.msk.bf16.vlgmr.msra.gmra.mrb[0].mxu0 %vm981_vm2, %v961_v20 }
 0x249   : > { %2020 = vmatprep.mubr.msk.bf16.mxu0 %vm2522_vm1, %v2521_v17 }
 0x31b   : > { %v1019_v22 = vpop.f32.mrb[0].mxu0 }
 0x31c   : > { %v1020_v23 = vadd.f32 %v1942_v21, %v1019_v22  ;;  %v2010_v24 = vpop.f32.mrb[1].mxu0 }
 0x31d   : > { %v1022_v25 = vpop.f32.mrb[2].mxu0 }
 0x31e   : > { %v1030_v26 = vpack.c.bf16 %v1020_v23, %v1020_v23  ;;  %v2011_v27 = vpop.f32.mrb[3].mxu0  ;;  %v1950_v23 = vld [vmem:[%s3250_s2] ss:$0 sm:$0xff] }
 0x320   : > { %1145 = vrot.lane.b32.xlu1 %v1030_v26, %s2523_s6  ;;  %1032 = vrot.lane.b32.xlu0 %v1030_v26, %s2524_s3 }
 0x324   : > { %1147 = vrot.lane.b32.xlu0 %v1030_v26, %s2525_s1 }
 0x392   : > { %v1033_v28 = vpop.permute.xlu0 %1032  ;;  %v1146_v32 = vpop.permute.xlu1 %1145 }
 0x393   : > { %v1039_v29 = vsel %vm1034_vm3, %v1033_v28, 0 }
 0x394   : > { %2013 = vmatpush3.bf16.xpose.msra.mxu1 %v1039_v29 }
 0x395   : > { %2024 = vmatprep.subr.bf16.mxu1 %v2521_v17 }
 0x396   : > { %v1148_v30 = vpop.permute.xlu0 %1147 }
 0x397   : > { %v1153_v31 = vsel %vm1034_vm3, %v1148_v30, 0 }
 0x39b   : > { %2015 = vmatmul.mubr.msk.bf16.vlgmr.msra.gmra.mrb[0].mxu1 %vm1034_vm3, %v1030_v26 }
 0x39c   : > { %2025 = vmatpush3.bf16.xpose.msra.mxu1 %v1153_v31  ;;  %2026 = vmatprep.mubr.msk.bf16.mxu1 %vm2522_vm1, %v2521_v17 }
 0x39d   : > { %2036 = vmatprep.subr.bf16.mxu1 %v2521_v17 }
 0x3a3   : > { %2027 = vmatmul.mubr.msk.bf16.vlgmr.msra.gmra.mrb[4].mxu1 %vm1034_vm3, %v1146_v32 }
 0x3a4   : > { %2040 = vmatprep.mubr.msk.bf16.mxu1 %vm2522_vm1, %v2521_v17  ;;  %2037 = vmatpush3.bf16.msra.mxu1 %v2196_v8 }
 0x3a5   : > { %2038 = vmatprep.subr.bf16.mxu1 %v2521_v17 }
 0x3a8   : > { %2039 = vmatpush3.bf16.msra.mxu1 %v2197_v9 }
 0x3a9   : > { %2052 = vmatprep.subr.bf16.mxu1 %v2521_v17 }
 0x46e   : > { %v1075_v36 = vpop.f32.mrb[0].mxu1 }
 0x46f   : > { %v1081_v37 = vmul.f32 0.25, %v1075_v36  ;;  %v2016_v38 = vpop.f32.mrb[1].mxu1 }
 0x470   : > { %v1078_v39 = vpop.f32.mrb[2].mxu1  ;;  %v2199_v38 = vld [vmem:[%s2992_s29 + $0x8] sm:$0xff]  }
 0x471   : > { %v2017_v40 = vpop.f32.mrb[3].mxu1  ;;  %v1082_v41 = vsel %vm1029_vm4, %v1081_v37, -1e+09  ;;  %v2198_v37 = vld [vmem:[%s2992_s29] sm:$0xff]   ;;  %s3253_s29 = scalar_lea.vmem [#allocation10], %s2939_s4 }
 0x472   : > { %v1084_v42 = vsel %vm1083_vm5, %v1082_v41, -inf }
 0x473   : > { %1085 = vmax.xlane.f32.xlu1 %v1084_v42  ;;  %v1954_v42 = vld [vmem:[%s3251_s16] ss:$0 sm:$0xff] }
 0x476   : > { %v1189_v43 = vpop.f32.mrb[4].mxu1 }
 0x477   : > { %v1195_v44 = vmul.f32 0.25, %v1189_v43  ;;  %v2028_v45 = vpop.f32.mrb[5].mxu1 }
 0x478   : > { %v1192_v46 = vpop.f32.mrb[6].mxu1 }
 0x479   : > { %v2029_v47 = vpop.f32.mrb[7].mxu1  ;;  %v1196_v48 = vsel %vm1029_vm4, %v1195_v44, -1e+09  ;;  %v1955_v44 = vld [vmem:[%s3252_s21] ss:$0 sm:$0xff] }
 0x47a   : > { %v1197_v49 = vsel %vm1083_vm5, %v1196_v48, -inf }
 0x47b   : > { %1198 = vmax.xlane.f32.xlu0 %v1197_v49  ;;  %v2201_v49 = vld [vmem:[%s3002_s26 + $0x8] sm:$0xff]  }
 0x500   : > { %v1086_v50 = vpop.xlane.xlu1 %1085 }
 0x501   : > { %v1087_v51 = vsub.f32 %v1082_v41, %v1086_v50  ;;  %v2202_v50 = vld [vmem:[%s3002_s26 + $0x10] sm:$0xff]  }
 0x503   : > { %v1088_v52 = vmul.f32 1.442695, %v1087_v51  ;;  %v2203_v51 = vld [vmem:[%s3002_s26 + $0x18] sm:$0xff]  }
 0x505   : > { %2204 = vpow2.f32 %v1088_v52  ;;  %v1956_v52 = vld [vmem:[%s3253_s29] ss:$0 sm:$0xff] }
 0x508   : > { %v1199_v53 = vpop.xlane.xlu0 %1198 }
 0x509   : > { %v1200_v54 = vsub.f32 %v1196_v48, %v1199_v53  ;;  %v2200_v48 = vld [vmem:[%s3002_s26] sm:$0xff]  }
 0x50b   : > { %v1201_v55 = vmul.f32 1.442695, %v1200_v54 }
 0x50d   : > { %2206 = vpow2.f32 %v1201_v55 }
 0x50f   : > { %v2205_v56 = vpop.eup %2204 }
 0x510   : > { %v1090_v57 = vsel %vm1083_vm5, %v2205_v56, 0.0 }
 0x511   : > { %1091 = vadd.xlane.f32.xlu0 %v1090_v57 }
 0x517   : > { %v2207_v58 = vpop.eup %2206 }
 0x518   : > { %v1203_v59 = vsel %vm1083_vm5, %v2207_v58, 0.0 }
 0x519   : > { %1204 = vadd.xlane.f32.xlu1 %v1203_v59 }
 0x527   : > { %1096 = vrot.lane.b32.xlu0 %v1030_v26, %s2526_s11 }
 0x52a   : > { %1209 = vrot.lane.b32.xlu1 %v1030_v26, %s2527_s17 }
 0x59e   : > { %v1092_v60 = vpop.xlane.xlu0 %1091 }
 0x59f   : > { %2208 = vrcp.f32 %v1092_v60 }
 0x5a2   : > { %v1097_v61 = vpop.permute.xlu0 %1096 }
 0x5a3   : > { %v1103_v62 = vsel %vm1101_vm6, %v1097_v61, 0 }
 0x5a4   : > { %2019 = vmatpush3.bf16.msra.mxu0 %v1103_v62 }
 0x5a5   : > { %2030 = vmatprep.subr.bf16.mxu0 %v2521_v17 }
 0x5a6   : > { %v1205_v63 = vpop.xlane.xlu1 %1204 }
 0x5a7   : > { %2210 = vrcp.f32 %v1205_v63 }
 0x5a9   : > { %v2209_v0 = vpop.eup %2208 }
 0x5aa   : > { %v1094_v1 = vmul.f32 %v2209_v0, %v2205_v56  ;;  %v1210_v2 = vpop.permute.xlu1 %1209 }
 0x5ab   : > { %v1215_v4 = vsel %vm1101_vm6, %v1210_v2, 0 }
 0x5ac   : > { %v1095_v3 = vpack.c.bf16 %v1094_v1, %v1094_v1 }
 0x5ae   : > { %2021 = vmatmul.mubr.msk.bf16.vlgmr.msra.gmra.mrb[4].mxu0 %vm1083_vm5, %v1095_v3  ;;  %v1960_v3 = vld [vmem:[%s3254_s14] ss:$0 sm:$0xff] }
 0x5af   : > { %2031 = vmatpush3.bf16.msra.mxu0 %v1215_v4  ;;  %2032 = vmatprep.mubr.msk.bf16.mxu0 %vm2522_vm1, %v2521_v17 }
 0x5b0   : > { %2044 = vmatprep.subr.bf16.mxu0 %v2521_v17 }
 0x5b1   : > { %v2211_v5 = vpop.eup %2210 }
 0x5b2   : > { %v1207_v6 = vmul.f32 %v2211_v5, %v2207_v58 }
 0x5b4   : > { %v1208_v7 = vpack.c.bf16 %v1207_v6, %v1207_v6 }
 0x5b6   : > { %2033 = vmatmul.mubr.msk.bf16.vlgmr.msra.gmra.mrb[8].mxu0 %vm1083_vm5, %v1208_v7 }
 0x5b7   : > { %2048 = vmatprep.mubr.msk.bf16.mxu0 %vm2522_vm1, %v2521_v17  ;;  %2045 = vmatpush3.bf16.msra.mxu0 %v2198_v37 }
 0x5b8   : > { %2046 = vmatprep.subr.bf16.mxu0 %v2521_v17 }
 0x5bb   : > { %2047 = vmatpush3.bf16.msra.mxu0 %v2199_v38 }
 0x681   : > { %v1139_v10 = vpop.f32.mrb[4].mxu0 }
 0x682   : > { %v2022_v11 = vpop.f32.mrb[5].mxu0 }
 0x683   : > { %v1142_v12 = vpop.f32.mrb[6].mxu0 }
 0x684   : > { %v2023_v13 = vpop.f32.mrb[7].mxu0 }
 0x689   : > { %v1251_v14 = vpop.f32.mrb[8].mxu0 }
 0x68a   : > { %1258 = vrot.lane.b32.xlu1 %v1251_v14, %s2528_s7  ;;  %v2034_v15 = vpop.f32.mrb[9].mxu0 }
 0x68b   : > { %v1254_v16 = vpop.f32.mrb[10].mxu0 }
 0x68c   : > { %v2035_v18 = vpop.f32.mrb[11].mxu0 }
 0x6fc   : > { %v1259_v20 = vpop.permute.xlu1 %1258 }
 0x6fd   : > { %v1261_v21 = vsel %vm1034_vm3, %v1139_v10, %v1259_v20 }
 0x6fe   : > { %v1262_v22 = vpack.c.bf16 %v1261_v21, %v1261_v21 }
 0x700   : > { %2041 = vmatmul.mubr.msk.bf16.vlgmr.msra.gmra.mrb[8].mxu1 %vm981_vm2, %v1262_v22  ;;  %v1966_v22 = vld [vmem:[%s773_s25] ss:$0 sm:$0xff] }
 0x701   : > { %2060 = vmatprep.mubr.msk.bf16.mxu1 %vm2522_vm1, %v2521_v17  ;;  %2053 = vmatpush3.bf16.msra.mxu1 %v2200_v48 }
 0x702   : > { %2054 = vmatprep.subr.bf16.mxu1 %v2521_v17 }
 0x705   : > { %2055 = vmatpush3.bf16.msra.mxu1 %v2201_v49 }
 0x706   : > { %2056 = vmatprep.subr.bf16.mxu1 %v2521_v17 }
 0x709   : > { %2057 = vmatpush3.bf16.msra.mxu1 %v2202_v50 }
 0x70a   : > { %2058 = vmatprep.subr.bf16.mxu1 %v2521_v17 }
 0x70d   : > { %2059 = vmatpush3.bf16.msra.mxu1 %v2203_v51 }
 0x7d3   : > { %v1319_v24 = vpop.f32.mrb[8].mxu1 }
 0x7d4   : > { %v1320_v25 = vadd.f32 %v1950_v23, %v1319_v24  ;;  %v2042_v26 = vpop.f32.mrb[9].mxu1  ;;  %v1967_v24 = vld [vmem:[%s906_s24] ss:$0 sm:$0xff]  ;;  %s3257_s24 = sld [smem:[#allocation40_spill]] (!%p1968_p13) }
 0x7d5   : > { %v1322_v27 = vpop.f32.mrb[10].mxu1 }
 0x7d6   : > { %v2043_v28 = vpop.f32.mrb[11].mxu1  ;;  %v1325_v29 = vadd.f32 %v1320_v25, %v3023_v19  ;;  %v2220_v27 = vld [vmem:[%s3256_s13] sm:$0xff] (!%p1968_p13)  }
 0x7d7   : > { %v2529_v28 = vmov (!%p1968_p13), 0.0  }
 0x7d8   : > { %v1328_v30 = vsel %vm981_vm2, %v1325_v29, 0.0  ;;  %2064 = vmatprep.subr.bf16.mxu0 (!%p1968_p13), %v2529_v28 }
 0x7d9   : > { %1329 = vadd.xlane.f32.xlu0 %v1328_v30 }
 0x866   : > { %v1330_v31 = vpop.xlane.xlu0 %1329 }
 0x867   : > { %v1332_v32 = vmul.f32 0.03125, %v1330_v31  ;;  %v1969_v31 = vld [vmem:[%s3257_s24] ss:$0 sm:$0xff] (!%p1968_p13) }
 0x869   : > { %v1333_v33 = vsub.f32 %v1325_v29, %v1332_v32  ;;  %v2221_v29 = vld [vmem:[%s3256_s13 + $0x8] sm:$0xff] (!%p1968_p13)  }
 0x86b   : > { %v1334_v34 = vmul.f32 %v1333_v33, %v1333_v33 }
 0x86d   : > { %v1335_v36 = vsel %vm981_vm2, %v1334_v34, 0.0 }
 0x86e   : > { %1336 = vadd.xlane.f32.xlu1 %v1335_v36 }
 0x8fb   : > { %v1337_v19 = vpop.xlane.xlu1 %1336 }
 0x8fc   : > { %v1338_v39 = vmul.f32 0.03125, %v1337_v19  ;;  %v1630_v19 = vld [vmem:[%s3007_s9] sm:$0xff] (!%p1968_p13) }
 0x8fe   : > { %v1339_v40 = vadd.f32 1e-12, %v1338_v39  ;;  %v2531_v39 = vmov (!%p1968_p13), 0  }
 0x8ff   : > { %2218 = vset.pattern.permute.xlu1 (!%p1968_p13), %v2531_v39  ;;  %2219 = vset.pattern.permute.xlu0 (!%p1968_p13), %v2531_v39 }
 0x900   : > { %2212 = vrsqrt.f32 %v1339_v40  ;;  %1632 = vperm.xlu1 (!%p1968_p13), %2218, %v1630_v19  }
 0x90a   : > { %v2213_v41 = vpop.eup %2212 }
 0x90b   : > { %v1341_v43 = vmul.f32 %v2213_v41, %v1333_v33 }
 0x90d   : > { %v1348_v45 = vmul.f32 %v1954_v42, %v1341_v43 }
 0x90f   : > { %v1355_v46 = vadd.f32 %v1955_v44, %v1348_v45 }
 0x911   : > { %v1360_v47 = vpack.c.bf16 %v1355_v46, %v1355_v46 }
 0x913   : > { %2049 = vmatmul.mubr.msk.bf16.vlgmr.msra.gmra.mrb[12].mxu0 %vm981_vm2, %v1360_v47 }
 0x914   : > { %2065 = vmatpush3.bf16.msra.mxu0 (!%p1968_p13), %v2220_v27  ;;  %2068 = vmatprep.mubr.msk.bf16.mxu0 (!%p1968_p13), %vm2530_vm8, %v2529_v28 }
 0x915   : > { %2066 = vmatprep.subr.bf16.mxu0 (!%p1968_p13), %v2529_v28 }
 0x918   : > { %2067 = vmatpush3.bf16.msra.mxu0 (!%p1968_p13), %v2221_v29 }
 0x9e6   : > { %v1417_v53 = vpop.f32.mrb[12].mxu0 }
 0x9e7   : > { %v1418_v54 = vadd.f32 %v1956_v52, %v1417_v53  ;;  %v2050_v55 = vpop.f32.mrb[13].mxu0 }
 0x9e8   : > { %v1420_v56 = vpop.f32.mrb[14].mxu0 }
 0x9e9   : > { %v1424_v57 = vmul.f32 0.044715, %v1418_v54  ;;  %v2051_v58 = vpop.f32.mrb[15].mxu0  ;;  %v1423_v0 = vmul.f32 0.5, %v1418_v54 }
 0x9eb   : > { %v1425_v59 = vmul.f32 %v1424_v57, %v1418_v54 }
 0x9ed   : > { %v1426_v60 = vmul.f32 %v1425_v59, %v1418_v54 }
 0x9ef   : > { %v1427_v61 = vadd.f32 %v1426_v60, %v1418_v54 }
 0x9f1   : > { %v1428_v62 = vmul.f32 0.7978846, %v1427_v61 }
 0x9f3   : > { %2214 = vtanh.f32 %v1428_v62 }
 0x9fd   : > { %v2215_v63 = vpop.eup %2214 }
 0x9fe   : > { %v1430_v1 = vadd.f32 1.0, %v2215_v63 }
 0xa00   : > { %v1431_v2 = vmul.f32 %v1430_v1, %v1423_v0 }
 0xa02   : > { %v1440_v17 = vpack.c.bf16 %v1431_v2, %v1431_v2 }
 0xa04   : > { %2061 = vmatmul.mubr.msk.bf16.vlgmr.msra.gmra.mrb[12].mxu1 %vm1472_vm7, %v1440_v17 }
 0xad7   : > { %v1510_v4 = vpop.f32.mrb[12].mxu1 }
 0xad8   : > { %v1511_v5 = vadd.f32 %v1960_v3, %v1510_v4  ;;  %v2062_v6 = vpop.f32.mrb[13].mxu1 }
 0xad9   : > { %v1513_v7 = vpop.f32.mrb[14].mxu1 }
 0xada   : > { %v2063_v8 = vpop.f32.mrb[15].mxu1  ;;  %v1516_v9 = vadd.f32 %v1511_v5, %v1355_v46  ;;  %v1633_v46 = vpop.permute.xlu1 (!%p1968_p13), %1632 }
 0xadb   : > { %vm1634_vm9 = vcmp.eq.s32.totalorder (!%p1968_p13), %v3049_v35, %v1633_v46 }
 0xadc   : > { %v1519_v10 = vsel %vm981_vm2, %v1516_v9, 0.0 }
 0xadd   : > { %1520 = vadd.xlane.f32.xlu0 %v1519_v10 }
 0xb6a   : > { %v1521_v11 = vpop.xlane.xlu0 %1520 }
 0xb6b   : > { %v1522_v12 = vmul.f32 0.03125, %v1521_v11 }
 0xb6d   : > { %v1523_v13 = vsub.f32 %v1516_v9, %v1522_v12 }
 0xb6f   : > { %v1524_v14 = vmul.f32 %v1523_v13, %v1523_v13 }
 0xb71   : > { %v1525_v15 = vsel %vm981_vm2, %v1524_v14, 0.0 }
 0xb72   : > { %1526 = vadd.xlane.f32.xlu0 %v1525_v15 }
 0xbff   : > { %v1527_v16 = vpop.xlane.xlu0 %1526 }
 0xc00   : > { %v1528_v18 = vmul.f32 0.03125, %v1527_v16 }
 0xc02   : > { %v1529_v20 = vadd.f32 1e-12, %v1528_v18 }
 0xc04   : > { %2216 = vrsqrt.f32 %v1529_v20 }
 0xc0e   : > { %v2217_v21 = vpop.eup %2216 }
 0xc0f   : > { %v1531_v23 = vmul.f32 %v2217_v21, %v1523_v13  ;;  %1550 = sbr.rel (%p1968_p13) target bundleno = 3980 (0xf8c), region = 128 }
 0xc11   : > { %v1538_v25 = vmul.f32 %v1966_v22, %v1531_v23 }
 0xc13   : > { %v1545_v26 = vadd.f32 %v1967_v24, %v1538_v25 }
 0xc15   : > { %1546 = vst.msk [vmem:[#allocation2] sm:$0xff] %vm981_vm2, %v1545_v26  ;;  %v1555_v30 = vpack.c.bf16 (!%p1968_p13), %v1545_v26, %v1545_v26 }
 0xc17   : > { %2069 = vmatmul.mubr.msk.bf16.vlgmr.msra.gmra.mrb[0].mxu0 %vm981_vm2, %v1555_v30 }
 0xcea   : > { %v1612_v32 = vpop.f32.mrb[0].mxu0 }
 0xceb   : > { %v1613_v33 = vadd.f32 %v1969_v31, %v1612_v32  ;;  %v2070_v34 = vpop.f32.mrb[1].mxu0 }
 0xcec   : > { %v1615_v36 = vpop.f32.mrb[2].mxu0 }
 0xced   : > { %v2071_v37 = vpop.f32.mrb[3].mxu0  ;;  %v1618_v38 = vsel %vm1472_vm7, %v1613_v33, -inf }
 0xcee   : > { %1619 = vmax.xlane.f32.xlu0 %v1618_v38 }
 0xd7b   : > { %v1620_v40 = vpop.xlane.xlu0 %1619 }
 0xd7c   : > { %v1621_v41 = vsub.f32 %v1613_v33, %v1620_v40 }
 0xd7e   : > { %v1622_v42 = vmul.f32 1.442695, %v1621_v41 }
 0xd80   : > { %2222 = vpow2.f32 %v1622_v42 }
 0xd8a   : > { %v2223_v43 = vpop.eup %2222 }
 0xd8b   : > { %v1624_v44 = vsel %vm1472_vm7, %v2223_v43, 0.0 }
 0xd8c   : > { %1625 = vadd.xlane.f32.xlu0 %v1624_v44 }
 0xe19   : > { %v1626_v45 = vpop.xlane.xlu0 %1625 }
 0xe1a   : > { %2224 = vlog2.f32 %v1626_v45 }
 0xe24   : > { %v2225_v47 = vpop.eup %2224 }
 0xe25   : > { %v1628_v48 = vmul.f32 0.6931472, %v2225_v47 }
 0xe27   : > { %v1629_v49 = vsub.f32 %v1621_v41, %v1628_v48 }
 0xe29   : > { %v1635_v50 = vsel %vm1634_vm9, %v1629_v49, 0.0 }
 0xe2a   : > { %v1636_v51 = vsel %vm1472_vm7, %v1635_v50, 0.0 }
 0xe2b   : > { %1637 = vadd.xlane.f32.xlu1 %v1636_v51 }
 0xeb8   : > { %v1638_v52 = vpop.xlane.xlu1 %1637 }
 0xeb9   : > { %v1639_v53 = vsub.f32 0.0, %v1638_v52 }
 0xebb   : > { %v1641_v54 = vsel %vm1640_vm10, %v1639_v53, 0.0 }
 0xebc   : > { %1642 = vadd.xlane.f32.xlu0 %v1641_v54 }
 0xf49   : > { %v1643_v55 = vpop.xlane.xlu0 %1642 }
 0xf4a   : > { %v1644_v56 = vrot.slane %v1643_v55, 4 }
 0xf4c   : > { %v1645_v57 = vadd.f32 %v1644_v56, %v1643_v55 }
 0xf4e   : > { %v1646_v58 = vrot.slane %v1645_v57, 2 }
 0xf50   : > { %v1647_v59 = vadd.f32 %v1646_v58, %v1645_v57 }
 0xf52   : > { %v1648_v60 = vrot.slane %v1647_v59, 1 }
 0xf54   : > { %v1649_v61 = vadd.f32 %v1648_v60, %v1647_v59 }
 0xf56   : > { %2072 = vpush %v1649_v61 }
 0xf87   : > { %s2073_s9 = spop %2072 }
 0xf88   : > { %v1651_v35 = vstv %s2073_s9 }
 0xf89   : > { %v1653_v62 = vmul.f32 0.125, %v1651_v35 }
 0xf8b   : > { %1655 = vst.msk [vmem:[%s3258_s19] sm:$0x1] %vm1654_vm11, %v1653_v62 }
 0xf8c PF: > { %s38_s20 = sadd.s32 1, %s2512_s20   ;;  %s3259_s6 = sld [smem:[#allocation18_spill]] }
 0xf8d   : > { %p35_p12 = scmp.ge.s32.totalorder %s38_s20, 6   ;;  %s3260_s29 = sld [smem:[#allocation23_spill]] }
 0xf8e   : > { %s3261_s30 = sld [smem:[#allocation19_spill]]  ;;  %s3262_s0 = sld [smem:[#allocation20_spill]] }
 0xf8f   : > { %s3263_s19 = sld [smem:[#allocation21_spill]]  ;;  %s3264_s1 = sld [smem:[#allocation22_spill]] }
 0xf90   : > { %s3265_s27 = smov %s2488_s28  ;;  %37 = sbr.rel (!%p35_p12) target bundleno = 29 (0x1d), region = 228 }
 0xf92   : > { %s3266_s28 = smov %s3259_s6 }
 0xf97   :  { %1673 = vsyncpa [#allocation4], 1 }
 0xf98   :  { %1675 = vsyncpa [#allocation4 + $0x1], 1 }
 0xf99   :  { %1676 = vsyncpa [#allocation6], 1 }
 0xf9a   :  { %1678 = vsyncpa [#allocation6 + $0x1], 1 }
 0xf9b   :  { %1679 = vsyncpa [#allocation9], 1 }
 0xf9c   :  { %1681 = vsyncpa [#allocation9 + $0x1], 1 }
 0xf9d   :  { %1682 = vsyncpa [#allocation12], 1 }
 0xf9e   :  { %1684 = vsyncpa [#allocation12 + $0x1], 1 }

</bundles_post_ra>
